<compile_context>
chip_gen: v7x
topology: tpu7x:2x2x1
jax: 0.10.0
libtpu: 0.0.40
codegen_flags: <defaults>
</compile_context>

<pallas_src>
import functools

import jax
import jax.numpy as jnp
from jax.experimental import pallas as pl
from jax.experimental.pallas import tpu as pltpu

MEANS = (0.05, 0.02, 0.01)   # wt, tc, et class-imbalance weights
SMOOTHING = 1.0
LANE = 128
SUBLANE = 8


def _fold8(x):
    """(VT, 128) -> (8, 128) partial sums using only elementwise vreg adds."""
    return jnp.sum(x.reshape(-1, SUBLANE, LANE), axis=0)


def _cae_loss_kernel(unet_ref, lab_ref, inp_ref, cae_ref, out_ref,
                     ch_acc, glob_acc, int1_s, spt_s,
                     *, n_batch, n_vchunks, n_vox):
    n = pl.program_id(0)
    v = pl.program_id(1)

    @pl.when(jnp.logical_and(n == 0, v == 0))
    def _init_global():
        glob_acc[...] = jnp.zeros_like(glob_acc)

    @pl.when(v == 0)
    def _init_batch():
        ch_acc[...] = jnp.zeros_like(ch_acc)

    # Dense (VT, 128) per-channel slabs; casts happen on the VPU (inputs may
    # arrive in bf16 without doubling HBM traffic).
    ps = [unet_ref[0, c].astype(jnp.float32) for c in range(3)]
    ts = [lab_ref[0, c].astype(jnp.float32) for c in range(3)]

    # ---- per-(batch, channel) dice partials --------------------------------
    # intersection_0 is derived later: int0 = V - (sum(p)+sum(t)) + int1
    for c in range(3):
        ch_acc[c] = ch_acc[c] + _fold8(ps[c] * ts[c])           # intersection_1
        ch_acc[3 + c] = ch_acc[3 + c] + _fold8(ps[c] + ts[c])   # sum(p)+sum(t)

    # ---- boundary (surface) loss: channel softmax, fused num/den -----------
    m = jnp.maximum(jnp.maximum(ps[0], ps[1]), ps[2])
    e0 = jnp.exp(ps[0] - m)
    e1 = jnp.exp(ps[1] - m)
    e2 = jnp.exp(ps[2] - m)
    den = e0 + e1 + e2
    num = e0 * ts[0] + e1 * ts[1] + e2 * ts[2]
    glob_acc[0] = glob_acc[0] + _fold8(num * pl.reciprocal(den, approx=True))

    # ---- MSE partial between inp[:, 2] and the CAE output ------------------
    diff = inp_ref[0, 0].astype(jnp.float32) - cae_ref[0, 0].astype(jnp.float32)
    glob_acc[1] = glob_acc[1] + _fold8(diff * diff)

    # ---- end of batch: one XLU tree-reduce -> SMEM per-batch scalars -------
    @pl.when(v == n_vchunks - 1)
    def _store_batch():
        for c in range(3):
            int1_s[n, c] = jnp.sum(ch_acc[c])
            spt_s[n, c] = jnp.sum(ch_acc[3 + c])

    # ---- finalize at the very last grid step -------------------------------
    @pl.when(jnp.logical_and(n == n_batch - 1, v == n_vchunks - 1))
    def _finalize():
        total_vox = float(n_batch * n_vox)
        dice_loss = 0.0
        for c, mean in enumerate(MEANS):
            w1 = 1.0 / (mean ** 2)
            w0 = 1.0 / ((1.0 - mean) ** 2)
            u1 = 0.0
            for b in range(n_batch):
                u1 = u1 + spt_s[b, c]            # global sum(pred)+sum(target)
            u0 = 2.0 * total_vox - u1            # sum(1-pred)+sum(1-target)
            union = w0 * u0 + w1 * u1
            dsum = 0.0
            for b in range(n_batch):
                i1 = int1_s[b, c]
                i0 = float(n_vox) - spt_s[b, c] + i1
                inter = w0 * i0 + w1 * i1
                d = (2.0 * inter + SMOOTHING) / (union + SMOOTHING)
                d = jnp.where(d != d, 1.0, d)    # torch: dice[dice != dice] = 1.0
                dsum = dsum + d
            dice_loss = dice_loss + (1.0 - dsum / float(n_batch))
        dice_loss = dice_loss / 5.0
        boundary = jnp.sum(glob_acc[0]) / (3.0 * total_vox)
        mse = jnp.sum(glob_acc[1]) / total_vox
        out_ref[0, 0] = dice_loss + mse + boundary


def _pick_vtile(rows, cap=1024):
    """Largest multiple-of-8 divisor of `rows` that is <= cap.

    cap=1024 keeps per-step live VMEM (4 inputs, double-buffered) around
    8-9 MiB, which fits the default scoped VMEM limit on every TPU
    generation (incl. v7x's 64 MiB physical) while staying well above the
    ~1-2 MiB/step needed to hit the HBM roofline.
    """
    if rows <= cap:
        return rows
    for cand in range(cap - cap % 8, 7, -8):
        if rows % cand == 0:
            return cand
    return SUBLANE


def cae_loss(inp, label, unet_out, cae_out):
    """CaeLoss.forward(inp, label, unet_out, cae_out) -> scalar."""
    N, c_in, H, W, D = inp.shape
    V = H * W * D
    assert c_in >= 3, "CaeLoss reads inp[:, 2]"
    assert unet_out.shape[1] == 3 and label.shape[1] == 3 and cae_out.shape[1] == 1
    # TODO(synk): pad V to a multiple of 1024 to support arbitrary spatial shapes.
    assert V % (SUBLANE * LANE) == 0, "H*W*D must be a multiple of 1024"
    rows = V // LANE
    vt = _pick_vtile(rows)
    n_vchunks = rows // vt

    # Free metadata reshapes only — no channel slicing or dtype copies in HBM.
    unet = unet_out.reshape(N, 3, rows, LANE)
    lab = label.reshape(N, 3, rows, LANE)
    inp_r = inp.reshape(N, c_in, rows, LANE)
    cae = cae_out.reshape(N, 1, rows, LANE)

    kernel = functools.partial(
        _cae_loss_kernel, n_batch=N, n_vchunks=n_vchunks, n_vox=V)
    out = pl.pallas_call(
        kernel,
        out_shape=jax.ShapeDtypeStruct((1, 1), jnp.float32),
        grid_spec=pltpu.PrefetchScalarGridSpec(
            num_scalar_prefetch=0,
            grid=(N, n_vchunks),
            in_specs=[
                pl.BlockSpec((1, 3, vt, LANE), lambda n, v: (n, 0, v, 0)),
                pl.BlockSpec((1, 3, vt, LANE), lambda n, v: (n, 0, v, 0)),
                # channel 2 of inp is selected directly via the index_map
                pl.BlockSpec((1, 1, vt, LANE), lambda n, v: (n, 2, v, 0)),
                pl.BlockSpec((1, 1, vt, LANE), lambda n, v: (n, 0, v, 0)),
            ],
            out_specs=pl.BlockSpec(memory_space=pltpu.MemorySpace.SMEM),
            scratch_shapes=[
                pltpu.VMEM((6, SUBLANE, LANE), jnp.float32),  # per-batch dice partials
                pltpu.VMEM((2, SUBLANE, LANE), jnp.float32),  # boundary + mse partials
                pltpu.SMEM((N, 3), jnp.float32),  # intersection_1 per (batch, channel)
                pltpu.SMEM((N, 3), jnp.float32),  # sum(pred)+sum(target) per (batch, channel)
            ],
        ),
        compiler_params=pltpu.CompilerParams(
            dimension_semantics=("arbitrary", "arbitrary"),
            vmem_limit_bytes=32 * 1024 * 1024),
    )(unet, lab, inp_r, cae)
    return out[0, 0]


def _reference_loss(inp, label, unet_out, cae_out):
    """Pure-JAX reference mirroring the PyTorch module semantics."""
    inp = inp.astype(jnp.float32)
    label = label.astype(jnp.float32)
    unet_out = unet_out.astype(jnp.float32)
    cae_out = cae_out.astype(jnp.float32)

    mse = jnp.mean((inp[:, 2:3] - cae_out) ** 2)

    probs = jax.nn.softmax(unet_out, axis=1)
    boundary = jnp.mean(probs * label)

    def weighted_dice(pred, target, mean):
        w1 = 1.0 / mean ** 2
        w0 = 1.0 / (1.0 - mean) ** 2
        i1 = jnp.sum(pred * target, axis=(1, 2, 3))
        i0 = jnp.sum((1.0 - pred) * (1.0 - target), axis=(1, 2, 3))
        inter = w0 * i0 + w1 * i1
        u1 = jnp.sum(pred) + jnp.sum(target)
        u0 = jnp.sum(1.0 - pred) + jnp.sum(1.0 - target)
        union = w0 * u0 + w1 * u1
        dice = (2.0 * inter + SMOOTHING) / (union + SMOOTHING)
        dice = jnp.where(jnp.isnan(dice), 1.0, dice)
        return 1.0 - jnp.mean(dice)

    dice = (weighted_dice(unet_out[:, 0], label[:, 0], 0.05)
            + weighted_dice(unet_out[:, 1], label[:, 1], 0.02)
            + weighted_dice(unet_out[:, 2], label[:, 2], 0.01)) / 5.0
    return dice + mse + boundary


if __name__ == "__main__":
    key = jax.random.PRNGKey(0)
    k_inp, k_lab, k_unet, k_cae = jax.random.split(key, 4)

    N, C_IN, H, W, D = 2, 4, 16, 16, 16
    inp = jax.random.normal(k_inp, (N, C_IN, H, W, D), jnp.float32)
    label = (jax.random.uniform(k_lab, (N, 3, H, W, D)) > 0.5).astype(jnp.float32)
    unet_out = jax.random.normal(k_unet, (N, 3, H, W, D), jnp.float32)
    cae_out = jax.random.normal(k_cae, (N, 1, H, W, D), jnp.float32)

    loss = cae_loss(inp, label, unet_out, cae_out)
    loss = jax.block_until_ready(loss)

    ref = _reference_loss(inp, label, unet_out, cae_out)
    assert jnp.allclose(loss, ref, rtol=1e-3, atol=1e-4), (loss, ref)

    print("KERNEL_OK")
</pallas_src>

<mosaic_0001>
module attributes {stable_mosaic.version = 11 : i64} {
  func.func @_cae_loss_kernel(%arg0: i32, %arg1: i32, %arg2: memref<1x3x32x128xf32, #tpu.memory_space<vmem>>, %arg3: memref<1x3x32x128xf32, #tpu.memory_space<vmem>>, %arg4: memref<1x1x32x128xf32, #tpu.memory_space<vmem>>, %arg5: memref<1x1x32x128xf32, #tpu.memory_space<vmem>>, %arg6: memref<1x1xf32, #tpu.memory_space<smem>>, %arg7: memref<6x8x128xf32, #tpu.memory_space<vmem>>, %arg8: memref<2x8x128xf32, #tpu.memory_space<vmem>>, %arg9: memref<2x3xf32, #tpu.memory_space<smem>>, %arg10: memref<2x3xf32, #tpu.memory_space<smem>>) attributes {dimension_semantics = [#tpu.dimension_semantics<arbitrary>, #tpu.dimension_semantics<arbitrary>], iteration_bounds = array<i64: 2, 1>, scalar_prefetch = 0 : i64, scratch_operands = 4 : i64, tpu.core_type = #tpu.core_type<tc>, window_params = [{transform_indices = @transform_0, window_bounds = array<i64: 1, 3, 32, 128>}, {transform_indices = @transform_1, window_bounds = array<i64: 1, 3, 32, 128>}, {transform_indices = @transform_2, window_bounds = array<i64: 1, 1, 32, 128>}, {transform_indices = @transform_3, window_bounds = array<i64: 1, 1, 32, 128>}, {transform_indices = @transform_4, window_bounds = array<i64: 1, 1>}]} {
    %c0_i32 = arith.constant 0 : i32
    %0 = arith.cmpi eq, %arg0, %c0_i32 : i32
    %c0_i32_0 = arith.constant 0 : i32
    %1 = arith.cmpi eq, %arg1, %c0_i32_0 : i32
    %2 = arith.andi %0, %1 : i1
    %3 = arith.extui %2 : i1 to i32
    %c0_i32_1 = arith.constant 0 : i32
    %4 = arith.cmpi ne, %3, %c0_i32_1 : i32
    scf.if %4 {
      %cst_89 = arith.constant 0.000000e+00 : f32
      %121 = vector.broadcast %cst_89 : f32 to vector<2x8x128xf32>
      %c0_90 = arith.constant 0 : index
      %c0_91 = arith.constant 0 : index
      %c0_92 = arith.constant 0 : index
      %122 = vector.load %arg8[%c0_90, %c0_91, %c0_92] : memref<2x8x128xf32, #tpu.memory_space<vmem>>, vector<2x8x128xf32>
      tpu.vector_store %arg8[%c0_90, %c0_91, %c0_92], %121 {strides = array<i32>} : memref<2x8x128xf32, #tpu.memory_space<vmem>>, vector<2x8x128xf32>,
    } else {
    }
    %c0_i32_2 = arith.constant 0 : i32
    %5 = arith.cmpi eq, %arg1, %c0_i32_2 : i32
    %6 = arith.extui %5 : i1 to i32
    %c0_i32_3 = arith.constant 0 : i32
    %7 = arith.cmpi ne, %6, %c0_i32_3 : i32
    scf.if %7 {
      %cst_89 = arith.constant 0.000000e+00 : f32
      %121 = vector.broadcast %cst_89 : f32 to vector<6x8x128xf32>
      %c0_90 = arith.constant 0 : index
      %c0_91 = arith.constant 0 : index
      %c0_92 = arith.constant 0 : index
      %122 = vector.load %arg7[%c0_90, %c0_91, %c0_92] : memref<6x8x128xf32, #tpu.memory_space<vmem>>, vector<6x8x128xf32>
      tpu.vector_store %arg7[%c0_90, %c0_91, %c0_92], %121 {strides = array<i32>} : memref<6x8x128xf32, #tpu.memory_space<vmem>>, vector<6x8x128xf32>,
    } else {
    }
    %c0 = arith.constant 0 : index
    %c0_4 = arith.constant 0 : index
    %c0_5 = arith.constant 0 : index
    %c0_6 = arith.constant 0 : index
    %8 = vector.load %arg2[%c0, %c0_4, %c0_5, %c0_6] : memref<1x3x32x128xf32, #tpu.memory_space<vmem>>, vector<1x1x32x128xf32>
    %9 = vector.shape_cast %8 : vector<1x1x32x128xf32> to vector<32x128xf32>
    %c0_7 = arith.constant 0 : index
    %c1 = arith.constant 1 : index
    %c0_8 = arith.constant 0 : index
    %c0_9 = arith.constant 0 : index
    %10 = vector.load %arg2[%c0_7, %c1, %c0_8, %c0_9] : memref<1x3x32x128xf32, #tpu.memory_space<vmem>>, vector<1x1x32x128xf32>
    %11 = vector.shape_cast %10 : vector<1x1x32x128xf32> to vector<32x128xf32>
    %c0_10 = arith.constant 0 : index
    %c2 = arith.constant 2 : index
    %c0_11 = arith.constant 0 : index
    %c0_12 = arith.constant 0 : index
    %12 = vector.load %arg2[%c0_10, %c2, %c0_11, %c0_12] : memref<1x3x32x128xf32, #tpu.memory_space<vmem>>, vector<1x1x32x128xf32>
    %13 = vector.shape_cast %12 : vector<1x1x32x128xf32> to vector<32x128xf32>
    %c0_13 = arith.constant 0 : index
    %c0_14 = arith.constant 0 : index
    %c0_15 = arith.constant 0 : index
    %c0_16 = arith.constant 0 : index
    %14 = vector.load %arg3[%c0_13, %c0_14, %c0_15, %c0_16] : memref<1x3x32x128xf32, #tpu.memory_space<vmem>>, vector<1x1x32x128xf32>
    %15 = vector.shape_cast %14 : vector<1x1x32x128xf32> to vector<32x128xf32>
    %c0_17 = arith.constant 0 : index
    %c1_18 = arith.constant 1 : index
    %c0_19 = arith.constant 0 : index
    %c0_20 = arith.constant 0 : index
    %16 = vector.load %arg3[%c0_17, %c1_18, %c0_19, %c0_20] : memref<1x3x32x128xf32, #tpu.memory_space<vmem>>, vector<1x1x32x128xf32>
    %17 = vector.shape_cast %16 : vector<1x1x32x128xf32> to vector<32x128xf32>
    %c0_21 = arith.constant 0 : index
    %c2_22 = arith.constant 2 : index
    %c0_23 = arith.constant 0 : index
    %c0_24 = arith.constant 0 : index
    %18 = vector.load %arg3[%c0_21, %c2_22, %c0_23, %c0_24] : memref<1x3x32x128xf32, #tpu.memory_space<vmem>>, vector<1x1x32x128xf32>
    %19 = vector.shape_cast %18 : vector<1x1x32x128xf32> to vector<32x128xf32>
    %c0_25 = arith.constant 0 : index
    %c0_26 = arith.constant 0 : index
    %c0_27 = arith.constant 0 : index
    %20 = vector.load %arg7[%c0_25, %c0_26, %c0_27] : memref<6x8x128xf32, #tpu.memory_space<vmem>>, vector<1x8x128xf32>
    %21 = vector.shape_cast %20 : vector<1x8x128xf32> to vector<8x128xf32>
    %22 = arith.mulf %9, %15 : vector<32x128xf32>
    %23 = vector.shape_cast %22 : vector<32x128xf32> to vector<4x8x128xf32>
    %cst = arith.constant dense<0.000000e+00> : vector<8x128xf32>
    %24 = vector.multi_reduction <add>, %23, %cst [0] : vector<4x8x128xf32> to vector<8x128xf32>
    %25 = arith.addf %21, %24 : vector<8x128xf32>
    %c0_28 = arith.constant 0 : index
    %c0_29 = arith.constant 0 : index
    %c0_30 = arith.constant 0 : index
    %26 = vector.load %arg7[%c0_28, %c0_29, %c0_30] : memref<6x8x128xf32, #tpu.memory_space<vmem>>, vector<1x8x128xf32>
    %27 = vector.shape_cast %26 : vector<1x8x128xf32> to vector<8x128xf32>
    %28 = vector.shape_cast %25 : vector<8x128xf32> to vector<1x8x128xf32>
    tpu.vector_store %arg7[%c0_28, %c0_29, %c0_30], %28 {strides = array<i32>} : memref<6x8x128xf32, #tpu.memory_space<vmem>>, vector<1x8x128xf32>,
    %c3 = arith.constant 3 : index
    %c0_31 = arith.constant 0 : index
    %c0_32 = arith.constant 0 : index
    %29 = vector.load %arg7[%c3, %c0_31, %c0_32] : memref<6x8x128xf32, #tpu.memory_space<vmem>>, vector<1x8x128xf32>
    %30 = vector.shape_cast %29 : vector<1x8x128xf32> to vector<8x128xf32>
    %31 = arith.addf %9, %15 : vector<32x128xf32>
    %32 = vector.shape_cast %31 : vector<32x128xf32> to vector<4x8x128xf32>
    %cst_33 = arith.constant dense<0.000000e+00> : vector<8x128xf32>
    %33 = vector.multi_reduction <add>, %32, %cst_33 [0] : vector<4x8x128xf32> to vector<8x128xf32>
    %34 = arith.addf %30, %33 : vector<8x128xf32>
    %c3_34 = arith.constant 3 : index
    %c0_35 = arith.constant 0 : index
    %c0_36 = arith.constant 0 : index
    %35 = vector.load %arg7[%c3_34, %c0_35, %c0_36] : memref<6x8x128xf32, #tpu.memory_space<vmem>>, vector<1x8x128xf32>
    %36 = vector.shape_cast %35 : vector<1x8x128xf32> to vector<8x128xf32>
    %37 = vector.shape_cast %34 : vector<8x128xf32> to vector<1x8x128xf32>
    tpu.vector_store %arg7[%c3_34, %c0_35, %c0_36], %37 {strides = array<i32>} : memref<6x8x128xf32, #tpu.memory_space<vmem>>, vector<1x8x128xf32>,
    %c1_37 = arith.constant 1 : index
    %c0_38 = arith.constant 0 : index
    %c0_39 = arith.constant 0 : index
    %38 = vector.load %arg7[%c1_37, %c0_38, %c0_39] : memref<6x8x128xf32, #tpu.memory_space<vmem>>, vector<1x8x128xf32>
    %39 = vector.shape_cast %38 : vector<1x8x128xf32> to vector<8x128xf32>
    %40 = arith.mulf %11, %17 : vector<32x128xf32>
    %41 = vector.shape_cast %40 : vector<32x128xf32> to vector<4x8x128xf32>
    %cst_40 = arith.constant dense<0.000000e+00> : vector<8x128xf32>
    %42 = vector.multi_reduction <add>, %41, %cst_40 [0] : vector<4x8x128xf32> to vector<8x128xf32>
    %43 = arith.addf %39, %42 : vector<8x128xf32>
    %c1_41 = arith.constant 1 : index
    %c0_42 = arith.constant 0 : index
    %c0_43 = arith.constant 0 : index
    %44 = vector.load %arg7[%c1_41, %c0_42, %c0_43] : memref<6x8x128xf32, #tpu.memory_space<vmem>>, vector<1x8x128xf32>
    %45 = vector.shape_cast %44 : vector<1x8x128xf32> to vector<8x128xf32>
    %46 = vector.shape_cast %43 : vector<8x128xf32> to vector<1x8x128xf32>
    tpu.vector_store %arg7[%c1_41, %c0_42, %c0_43], %46 {strides = array<i32>} : memref<6x8x128xf32, #tpu.memory_space<vmem>>, vector<1x8x128xf32>,
    %c4 = arith.constant 4 : index
    %c0_44 = arith.constant 0 : index
    %c0_45 = arith.constant 0 : index
    %47 = vector.load %arg7[%c4, %c0_44, %c0_45] : memref<6x8x128xf32, #tpu.memory_space<vmem>>, vector<1x8x128xf32>
    %48 = vector.shape_cast %47 : vector<1x8x128xf32> to vector<8x128xf32>
    %49 = arith.addf %11, %17 : vector<32x128xf32>
    %50 = vector.shape_cast %49 : vector<32x128xf32> to vector<4x8x128xf32>
    %cst_46 = arith.constant dense<0.000000e+00> : vector<8x128xf32>
    %51 = vector.multi_reduction <add>, %50, %cst_46 [0] : vector<4x8x128xf32> to vector<8x128xf32>
    %52 = arith.addf %48, %51 : vector<8x128xf32>
    %c4_47 = arith.constant 4 : index
    %c0_48 = arith.constant 0 : index
    %c0_49 = arith.constant 0 : index
    %53 = vector.load %arg7[%c4_47, %c0_48, %c0_49] : memref<6x8x128xf32, #tpu.memory_space<vmem>>, vector<1x8x128xf32>
    %54 = vector.shape_cast %53 : vector<1x8x128xf32> to vector<8x128xf32>
    %55 = vector.shape_cast %52 : vector<8x128xf32> to vector<1x8x128xf32>
    tpu.vector_store %arg7[%c4_47, %c0_48, %c0_49], %55 {strides = array<i32>} : memref<6x8x128xf32, #tpu.memory_space<vmem>>, vector<1x8x128xf32>,
    %c2_50 = arith.constant 2 : index
    %c0_51 = arith.constant 0 : index
    %c0_52 = arith.constant 0 : index
    %56 = vector.load %arg7[%c2_50, %c0_51, %c0_52] : memref<6x8x128xf32, #tpu.memory_space<vmem>>, vector<1x8x128xf32>
    %57 = vector.shape_cast %56 : vector<1x8x128xf32> to vector<8x128xf32>
    %58 = arith.mulf %13, %19 : vector<32x128xf32>
    %59 = vector.shape_cast %58 : vector<32x128xf32> to vector<4x8x128xf32>
    %cst_53 = arith.constant dense<0.000000e+00> : vector<8x128xf32>
    %60 = vector.multi_reduction <add>, %59, %cst_53 [0] : vector<4x8x128xf32> to vector<8x128xf32>
    %61 = arith.addf %57, %60 : vector<8x128xf32>
    %c2_54 = arith.constant 2 : index
    %c0_55 = arith.constant 0 : index
    %c0_56 = arith.constant 0 : index
    %62 = vector.load %arg7[%c2_54, %c0_55, %c0_56] : memref<6x8x128xf32, #tpu.memory_space<vmem>>, vector<1x8x128xf32>
    %63 = vector.shape_cast %62 : vector<1x8x128xf32> to vector<8x128xf32>
    %64 = vector.shape_cast %61 : vector<8x128xf32> to vector<1x8x128xf32>
    tpu.vector_store %arg7[%c2_54, %c0_55, %c0_56], %64 {strides = array<i32>} : memref<6x8x128xf32, #tpu.memory_space<vmem>>, vector<1x8x128xf32>,
    %c5 = arith.constant 5 : index
    %c0_57 = arith.constant 0 : index
    %c0_58 = arith.constant 0 : index
    %65 = vector.load %arg7[%c5, %c0_57, %c0_58] : memref<6x8x128xf32, #tpu.memory_space<vmem>>, vector<1x8x128xf32>
    %66 = vector.shape_cast %65 : vector<1x8x128xf32> to vector<8x128xf32>
    %67 = arith.addf %13, %19 : vector<32x128xf32>
    %68 = vector.shape_cast %67 : vector<32x128xf32> to vector<4x8x128xf32>
    %cst_59 = arith.constant dense<0.000000e+00> : vector<8x128xf32>
    %69 = vector.multi_reduction <add>, %68, %cst_59 [0] : vector<4x8x128xf32> to vector<8x128xf32>
    %70 = arith.addf %66, %69 : vector<8x128xf32>
    %c5_60 = arith.constant 5 : index
    %c0_61 = arith.constant 0 : index
    %c0_62 = arith.constant 0 : index
    %71 = vector.load %arg7[%c5_60, %c0_61, %c0_62] : memref<6x8x128xf32, #tpu.memory_space<vmem>>, vector<1x8x128xf32>
    %72 = vector.shape_cast %71 : vector<1x8x128xf32> to vector<8x128xf32>
    %73 = vector.shape_cast %70 : vector<8x128xf32> to vector<1x8x128xf32>
    tpu.vector_store %arg7[%c5_60, %c0_61, %c0_62], %73 {strides = array<i32>} : memref<6x8x128xf32, #tpu.memory_space<vmem>>, vector<1x8x128xf32>,
    %74 = arith.maximumf %9, %11 : vector<32x128xf32>
    %75 = arith.maximumf %74, %13 : vector<32x128xf32>
    %76 = arith.subf %9, %75 : vector<32x128xf32>
    %77 = math.exp %76 : vector<32x128xf32>
    %78 = arith.subf %11, %75 : vector<32x128xf32>
    %79 = math.exp %78 : vector<32x128xf32>
    %80 = arith.subf %13, %75 : vector<32x128xf32>
    %81 = math.exp %80 : vector<32x128xf32>
    %82 = arith.addf %77, %79 : vector<32x128xf32>
    %83 = arith.addf %82, %81 : vector<32x128xf32>
    %84 = arith.mulf %77, %15 : vector<32x128xf32>
    %85 = arith.mulf %79, %17 : vector<32x128xf32>
    %86 = arith.addf %84, %85 : vector<32x128xf32>
    %87 = arith.mulf %81, %19 : vector<32x128xf32>
    %88 = arith.addf %86, %87 : vector<32x128xf32>
    %c0_63 = arith.constant 0 : index
    %c0_64 = arith.constant 0 : index
    %c0_65 = arith.constant 0 : index
    %89 = vector.load %arg8[%c0_63, %c0_64, %c0_65] : memref<2x8x128xf32, #tpu.memory_space<vmem>>, vector<1x8x128xf32>
    %90 = vector.shape_cast %89 : vector<1x8x128xf32> to vector<8x128xf32>
    %91 = tpu.reciprocal %83 {approx = true} : vector<32x128xf32> -> vector<32x128xf32>
    %92 = arith.mulf %88, %91 : vector<32x128xf32>
    %93 = vector.shape_cast %92 : vector<32x128xf32> to vector<4x8x128xf32>
    %cst_66 = arith.constant dense<0.000000e+00> : vector<8x128xf32>
    %94 = vector.multi_reduction <add>, %93, %cst_66 [0] : vector<4x8x128xf32> to vector<8x128xf32>
    %95 = arith.addf %90, %94 : vector<8x128xf32>
    %c0_67 = arith.constant 0 : index
    %c0_68 = arith.constant 0 : index
    %c0_69 = arith.constant 0 : index
    %96 = vector.load %arg8[%c0_67, %c0_68, %c0_69] : memref<2x8x128xf32, #tpu.memory_space<vmem>>, vector<1x8x128xf32>
    %97 = vector.shape_cast %96 : vector<1x8x128xf32> to vector<8x128xf32>
    %98 = vector.shape_cast %95 : vector<8x128xf32> to vector<1x8x128xf32>
    tpu.vector_store %arg8[%c0_67, %c0_68, %c0_69], %98 {strides = array<i32>} : memref<2x8x128xf32, #tpu.memory_space<vmem>>, vector<1x8x128xf32>,
    %c0_70 = arith.constant 0 : index
    %c0_71 = arith.constant 0 : index
    %c0_72 = arith.constant 0 : index
    %c0_73 = arith.constant 0 : index
    %99 = vector.load %arg4[%c0_70, %c0_71, %c0_72, %c0_73] : memref<1x1x32x128xf32, #tpu.memory_space<vmem>>, vector<1x1x32x128xf32>
    %100 = vector.shape_cast %99 : vector<1x1x32x128xf32> to vector<32x128xf32>
    %c0_74 = arith.constant 0 : index
    %c0_75 = arith.constant 0 : index
    %c0_76 = arith.constant 0 : index
    %c0_77 = arith.constant 0 : index
    %101 = vector.load %arg5[%c0_74, %c0_75, %c0_76, %c0_77] : memref<1x1x32x128xf32, #tpu.memory_space<vmem>>, vector<1x1x32x128xf32>
    %102 = vector.shape_cast %101 : vector<1x1x32x128xf32> to vector<32x128xf32>
    %103 = arith.subf %100, %102 : vector<32x128xf32>
    %c1_78 = arith.constant 1 : index
    %c0_79 = arith.constant 0 : index
    %c0_80 = arith.constant 0 : index
    %104 = vector.load %arg8[%c1_78, %c0_79, %c0_80] : memref<2x8x128xf32, #tpu.memory_space<vmem>>, vector<1x8x128xf32>
    %105 = vector.shape_cast %104 : vector<1x8x128xf32> to vector<8x128xf32>
    %106 = arith.mulf %103, %103 : vector<32x128xf32>
    %107 = vector.shape_cast %106 : vector<32x128xf32> to vector<4x8x128xf32>
    %cst_81 = arith.constant dense<0.000000e+00> : vector<8x128xf32>
    %108 = vector.multi_reduction <add>, %107, %cst_81 [0] : vector<4x8x128xf32> to vector<8x128xf32>
    %109 = arith.addf %105, %108 : vector<8x128xf32>
    %c1_82 = arith.constant 1 : index
    %c0_83 = arith.constant 0 : index
    %c0_84 = arith.constant 0 : index
    %110 = vector.load %arg8[%c1_82, %c0_83, %c0_84] : memref<2x8x128xf32, #tpu.memory_space<vmem>>, vector<1x8x128xf32>
    %111 = vector.shape_cast %110 : vector<1x8x128xf32> to vector<8x128xf32>
    %112 = vector.shape_cast %109 : vector<8x128xf32> to vector<1x8x128xf32>
    tpu.vector_store %arg8[%c1_82, %c0_83, %c0_84], %112 {strides = array<i32>} : memref<2x8x128xf32, #tpu.memory_space<vmem>>, vector<1x8x128xf32>,
    %c0_i32_85 = arith.constant 0 : i32
    %113 = arith.cmpi eq, %arg1, %c0_i32_85 : i32
    %114 = arith.extui %113 : i1 to i32
    %c0_i32_86 = arith.constant 0 : i32
    %115 = arith.cmpi ne, %114, %c0_i32_86 : i32
    scf.if %115 {
      %c0_89 = arith.constant 0 : index
      %c0_90 = arith.constant 0 : index
      %c0_91 = arith.constant 0 : index
      %121 = vector.load %arg7[%c0_89, %c0_90, %c0_91] : memref<6x8x128xf32, #tpu.memory_space<vmem>>, vector<1x8x128xf32>
      %122 = vector.shape_cast %121 : vector<1x8x128xf32> to vector<8x128xf32>
      %123 = vector.shape_cast %122 : vector<8x128xf32> to vector<1x8x128xf32>
      %cst_92 = arith.constant dense<0.000000e+00> : vector<1xf32>
      %124 = vector.multi_reduction <add>, %123, %cst_92 [1, 2] : vector<1x8x128xf32> to vector<1xf32>
      %125 = vector.shape_cast %124 : vector<1xf32> to vector<1x1x1xf32>
      %126 = vector.extract %125[0, 0, 0] : f32 from vector<1x1x1xf32>
      %127 = arith.index_cast %arg0 : i32 to index
      %c0_93 = arith.constant 0 : index
      %128 = memref.load %arg9[%127, %c0_93] : memref<2x3xf32, #tpu.memory_space<smem>>
      memref.store %126, %arg9[%127, %c0_93] : memref<2x3xf32, #tpu.memory_space<smem>>
      %c3_94 = arith.constant 3 : index
      %c0_95 = arith.constant 0 : index
      %c0_96 = arith.constant 0 : index
      %129 = vector.load %arg7[%c3_94, %c0_95, %c0_96] : memref<6x8x128xf32, #tpu.memory_space<vmem>>, vector<1x8x128xf32>
      %130 = vector.shape_cast %129 : vector<1x8x128xf32> to vector<8x128xf32>
      %131 = vector.shape_cast %130 : vector<8x128xf32> to vector<1x8x128xf32>
      %cst_97 = arith.constant dense<0.000000e+00> : vector<1xf32>
      %132 = vector.multi_reduction <add>, %131, %cst_97 [1, 2] : vector<1x8x128xf32> to vector<1xf32>
      %133 = vector.shape_cast %132 : vector<1xf32> to vector<1x1x1xf32>
      %134 = vector.extract %133[0, 0, 0] : f32 from vector<1x1x1xf32>
      %135 = arith.index_cast %arg0 : i32 to index
      %c0_98 = arith.constant 0 : index
      %136 = memref.load %arg10[%135, %c0_98] : memref<2x3xf32, #tpu.memory_space<smem>>
      memref.store %134, %arg10[%135, %c0_98] : memref<2x3xf32, #tpu.memory_space<smem>>
      %c1_99 = arith.constant 1 : index
      %c0_100 = arith.constant 0 : index
      %c0_101 = arith.constant 0 : index
      %137 = vector.load %arg7[%c1_99, %c0_100, %c0_101] : memref<6x8x128xf32, #tpu.memory_space<vmem>>, vector<1x8x128xf32>
      %138 = vector.shape_cast %137 : vector<1x8x128xf32> to vector<8x128xf32>
      %139 = vector.shape_cast %138 : vector<8x128xf32> to vector<1x8x128xf32>
      %cst_102 = arith.constant dense<0.000000e+00> : vector<1xf32>
      %140 = vector.multi_reduction <add>, %139, %cst_102 [1, 2] : vector<1x8x128xf32> to vector<1xf32>
      %141 = vector.shape_cast %140 : vector<1xf32> to vector<1x1x1xf32>
      %142 = vector.extract %141[0, 0, 0] : f32 from vector<1x1x1xf32>
      %143 = arith.index_cast %arg0 : i32 to index
      %c1_103 = arith.constant 1 : index
      %144 = memref.load %arg9[%143, %c1_103] : memref<2x3xf32, #tpu.memory_space<smem>>
      memref.store %142, %arg9[%143, %c1_103] : memref<2x3xf32, #tpu.memory_space<smem>>
      %c4_104 = arith.constant 4 : index
      %c0_105 = arith.constant 0 : index
      %c0_106 = arith.constant 0 : index
      %145 = vector.load %arg7[%c4_104, %c0_105, %c0_106] : memref<6x8x128xf32, #tpu.memory_space<vmem>>, vector<1x8x128xf32>
      %146 = vector.shape_cast %145 : vector<1x8x128xf32> to vector<8x128xf32>
      %147 = vector.shape_cast %146 : vector<8x128xf32> to vector<1x8x128xf32>
      %cst_107 = arith.constant dense<0.000000e+00> : vector<1xf32>
      %148 = vector.multi_reduction <add>, %147, %cst_107 [1, 2] : vector<1x8x128xf32> to vector<1xf32>
      %149 = vector.shape_cast %148 : vector<1xf32> to vector<1x1x1xf32>
      %150 = vector.extract %149[0, 0, 0] : f32 from vector<1x1x1xf32>
      %151 = arith.index_cast %arg0 : i32 to index
      %c1_108 = arith.constant 1 : index
      %152 = memref.load %arg10[%151, %c1_108] : memref<2x3xf32, #tpu.memory_space<smem>>
      memref.store %150, %arg10[%151, %c1_108] : memref<2x3xf32, #tpu.memory_space<smem>>
      %c2_109 = arith.constant 2 : index
      %c0_110 = arith.constant 0 : index
      %c0_111 = arith.constant 0 : index
      %153 = vector.load %arg7[%c2_109, %c0_110, %c0_111] : memref<6x8x128xf32, #tpu.memory_space<vmem>>, vector<1x8x128xf32>
      %154 = vector.shape_cast %153 : vector<1x8x128xf32> to vector<8x128xf32>
      %155 = vector.shape_cast %154 : vector<8x128xf32> to vector<1x8x128xf32>
      %cst_112 = arith.constant dense<0.000000e+00> : vector<1xf32>
      %156 = vector.multi_reduction <add>, %155, %cst_112 [1, 2] : vector<1x8x128xf32> to vector<1xf32>
      %157 = vector.shape_cast %156 : vector<1xf32> to vector<1x1x1xf32>
      %158 = vector.extract %157[0, 0, 0] : f32 from vector<1x1x1xf32>
      %159 = arith.index_cast %arg0 : i32 to index
      %c2_113 = arith.constant 2 : index
      %160 = memref.load %arg9[%159, %c2_113] : memref<2x3xf32, #tpu.memory_space<smem>>
      memref.store %158, %arg9[%159, %c2_113] : memref<2x3xf32, #tpu.memory_space<smem>>
      %c5_114 = arith.constant 5 : index
      %c0_115 = arith.constant 0 : index
      %c0_116 = arith.constant 0 : index
      %161 = vector.load %arg7[%c5_114, %c0_115, %c0_116] : memref<6x8x128xf32, #tpu.memory_space<vmem>>, vector<1x8x128xf32>
      %162 = vector.shape_cast %161 : vector<1x8x128xf32> to vector<8x128xf32>
      %163 = vector.shape_cast %162 : vector<8x128xf32> to vector<1x8x128xf32>
      %cst_117 = arith.constant dense<0.000000e+00> : vector<1xf32>
      %164 = vector.multi_reduction <add>, %163, %cst_117 [1, 2] : vector<1x8x128xf32> to vector<1xf32>
      %165 = vector.shape_cast %164 : vector<1xf32> to vector<1x1x1xf32>
      %166 = vector.extract %165[0, 0, 0] : f32 from vector<1x1x1xf32>
      %167 = arith.index_cast %arg0 : i32 to index
      %c2_118 = arith.constant 2 : index
      %168 = memref.load %arg10[%167, %c2_118] : memref<2x3xf32, #tpu.memory_space<smem>>
      memref.store %166, %arg10[%167, %c2_118] : memref<2x3xf32, #tpu.memory_space<smem>>
    } else {
    }
    %c1_i32 = arith.constant 1 : i32
    %116 = arith.cmpi eq, %arg0, %c1_i32 : i32
    %c0_i32_87 = arith.constant 0 : i32
    %117 = arith.cmpi eq, %arg1, %c0_i32_87 : i32
    %118 = arith.andi %116, %117 : i1
    %119 = arith.extui %118 : i1 to i32
    %c0_i32_88 = arith.constant 0 : i32
    %120 = arith.cmpi ne, %119, %c0_i32_88 : i32
    scf.if %120 {
      %c0_89 = arith.constant 0 : index
      %c0_90 = arith.constant 0 : index
      %121 = memref.load %arg10[%c0_89, %c0_90] : memref<2x3xf32, #tpu.memory_space<smem>>
      %cst_91 = arith.constant 0.000000e+00 : f32
      %122 = arith.addf %cst_91, %121 : f32
      %c1_92 = arith.constant 1 : index
      %c0_93 = arith.constant 0 : index
      %123 = memref.load %arg10[%c1_92, %c0_93] : memref<2x3xf32, #tpu.memory_space<smem>>
      %124 = arith.addf %122, %123 : f32
      %cst_94 = arith.constant 1.638400e+04 : f32
      %125 = arith.subf %cst_94, %124 : f32
      %cst_95 = arith.constant 1.1080333 : f32
      %126 = arith.mulf %cst_95, %125 : f32
      %cst_96 = arith.constant 4.000000e+02 : f32
      %127 = arith.mulf %cst_96, %124 : f32
      %128 = arith.addf %126, %127 : f32
      %c0_97 = arith.constant 0 : index
      %c0_98 = arith.constant 0 : index
      %129 = memref.load %arg9[%c0_97, %c0_98] : memref<2x3xf32, #tpu.memory_space<smem>>
      %c0_99 = arith.constant 0 : index
      %c0_100 = arith.constant 0 : index
      %130 = memref.load %arg10[%c0_99, %c0_100] : memref<2x3xf32, #tpu.memory_space<smem>>
      %cst_101 = arith.constant 4.096000e+03 : f32
      %131 = arith.subf %cst_101, %130 : f32
      %132 = arith.addf %131, %129 : f32
      %cst_102 = arith.constant 1.1080333 : f32
      %133 = arith.mulf %cst_102, %132 : f32
      %cst_103 = arith.constant 4.000000e+02 : f32
      %134 = arith.mulf %cst_103, %129 : f32
      %135 = arith.addf %133, %134 : f32
      %cst_104 = arith.constant 2.000000e+00 : f32
      %136 = arith.mulf %cst_104, %135 : f32
      %cst_105 = arith.constant 1.000000e+00 : f32
      %137 = arith.addf %136, %cst_105 : f32
      %cst_106 = arith.constant 1.000000e+00 : f32
      %138 = arith.addf %128, %cst_106 : f32
      %139 = arith.divf %137, %138 : f32
      %140 = arith.cmpf one, %139, %139 : f32
      %cst_107 = arith.constant 1.000000e+00 : f32
      %141 = arith.select %140, %cst_107, %139 : f32
      %cst_108 = arith.constant 0.000000e+00 : f32
      %142 = arith.addf %cst_108, %141 : f32
      %c1_109 = arith.constant 1 : index
      %c0_110 = arith.constant 0 : index
      %143 = memref.load %arg9[%c1_109, %c0_110] : memref<2x3xf32, #tpu.memory_space<smem>>
      %c1_111 = arith.constant 1 : index
      %c0_112 = arith.constant 0 : index
      %144 = memref.load %arg10[%c1_111, %c0_112] : memref<2x3xf32, #tpu.memory_space<smem>>
      %cst_113 = arith.constant 4.096000e+03 : f32
      %145 = arith.subf %cst_113, %144 : f32
      %146 = arith.addf %145, %143 : f32
      %cst_114 = arith.constant 1.1080333 : f32
      %147 = arith.mulf %cst_114, %146 : f32
      %cst_115 = arith.constant 4.000000e+02 : f32
      %148 = arith.mulf %cst_115, %143 : f32
      %149 = arith.addf %147, %148 : f32
      %cst_116 = arith.constant 2.000000e+00 : f32
      %150 = arith.mulf %cst_116, %149 : f32
      %cst_117 = arith.constant 1.000000e+00 : f32
      %151 = arith.addf %150, %cst_117 : f32
      %cst_118 = arith.constant 1.000000e+00 : f32
      %152 = arith.addf %128, %cst_118 : f32
      %153 = arith.divf %151, %152 : f32
      %154 = arith.cmpf one, %153, %153 : f32
      %cst_119 = arith.constant 1.000000e+00 : f32
      %155 = arith.select %154, %cst_119, %153 : f32
      %156 = arith.addf %142, %155 : f32
      %cst_120 = arith.constant 2.000000e+00 : f32
      %157 = arith.divf %156, %cst_120 : f32
      %cst_121 = arith.constant 1.000000e+00 : f32
      %158 = arith.subf %cst_121, %157 : f32
      %cst_122 = arith.constant 0.000000e+00 : f32
      %159 = arith.addf %cst_122, %158 : f32
      %c0_123 = arith.constant 0 : index
      %c1_124 = arith.constant 1 : index
      %160 = memref.load %arg10[%c0_123, %c1_124] : memref<2x3xf32, #tpu.memory_space<smem>>
      %cst_125 = arith.constant 0.000000e+00 : f32
      %161 = arith.addf %cst_125, %160 : f32
      %c1_126 = arith.constant 1 : index
      %c1_127 = arith.constant 1 : index
      %162 = memref.load %arg10[%c1_126, %c1_127] : memref<2x3xf32, #tpu.memory_space<smem>>
      %163 = arith.addf %161, %162 : f32
      %cst_128 = arith.constant 1.638400e+04 : f32
      %164 = arith.subf %cst_128, %163 : f32
      %cst_129 = arith.constant 1.04123282 : f32
      %165 = arith.mulf %cst_129, %164 : f32
      %cst_130 = arith.constant 2.500000e+03 : f32
      %166 = arith.mulf %cst_130, %163 : f32
      %167 = arith.addf %165, %166 : f32
      %c0_131 = arith.constant 0 : index
      %c1_132 = arith.constant 1 : index
      %168 = memref.load %arg9[%c0_131, %c1_132] : memref<2x3xf32, #tpu.memory_space<smem>>
      %c0_133 = arith.constant 0 : index
      %c1_134 = arith.constant 1 : index
      %169 = memref.load %arg10[%c0_133, %c1_134] : memref<2x3xf32, #tpu.memory_space<smem>>
      %cst_135 = arith.constant 4.096000e+03 : f32
      %170 = arith.subf %cst_135, %169 : f32
      %171 = arith.addf %170, %168 : f32
      %cst_136 = arith.constant 1.04123282 : f32
      %172 = arith.mulf %cst_136, %171 : f32
      %cst_137 = arith.constant 2.500000e+03 : f32
      %173 = arith.mulf %cst_137, %168 : f32
      %174 = arith.addf %172, %173 : f32
      %cst_138 = arith.constant 2.000000e+00 : f32
      %175 = arith.mulf %cst_138, %174 : f32
      %cst_139 = arith.constant 1.000000e+00 : f32
      %176 = arith.addf %175, %cst_139 : f32
      %cst_140 = arith.constant 1.000000e+00 : f32
      %177 = arith.addf %167, %cst_140 : f32
      %178 = arith.divf %176, %177 : f32
      %179 = arith.cmpf one, %178, %178 : f32
      %cst_141 = arith.constant 1.000000e+00 : f32
      %180 = arith.select %179, %cst_141, %178 : f32
      %cst_142 = arith.constant 0.000000e+00 : f32
      %181 = arith.addf %cst_142, %180 : f32
      %c1_143 = arith.constant 1 : index
      %c1_144 = arith.constant 1 : index
      %182 = memref.load %arg9[%c1_143, %c1_144] : memref<2x3xf32, #tpu.memory_space<smem>>
      %c1_145 = arith.constant 1 : index
      %c1_146 = arith.constant 1 : index
      %183 = memref.load %arg10[%c1_145, %c1_146] : memref<2x3xf32, #tpu.memory_space<smem>>
      %cst_147 = arith.constant 4.096000e+03 : f32
      %184 = arith.subf %cst_147, %183 : f32
      %185 = arith.addf %184, %182 : f32
      %cst_148 = arith.constant 1.04123282 : f32
      %186 = arith.mulf %cst_148, %185 : f32
      %cst_149 = arith.constant 2.500000e+03 : f32
      %187 = arith.mulf %cst_149, %182 : f32
      %188 = arith.addf %186, %187 : f32
      %cst_150 = arith.constant 2.000000e+00 : f32
      %189 = arith.mulf %cst_150, %188 : f32
      %cst_151 = arith.constant 1.000000e+00 : f32
      %190 = arith.addf %189, %cst_151 : f32
      %cst_152 = arith.constant 1.000000e+00 : f32
      %191 = arith.addf %167, %cst_152 : f32
      %192 = arith.divf %190, %191 : f32
      %193 = arith.cmpf one, %192, %192 : f32
      %cst_153 = arith.constant 1.000000e+00 : f32
      %194 = arith.select %193, %cst_153, %192 : f32
      %195 = arith.addf %181, %194 : f32
      %cst_154 = arith.constant 2.000000e+00 : f32
      %196 = arith.divf %195, %cst_154 : f32
      %cst_155 = arith.constant 1.000000e+00 : f32
      %197 = arith.subf %cst_155, %196 : f32
      %198 = arith.addf %159, %197 : f32
      %c0_156 = arith.constant 0 : index
      %c2_157 = arith.constant 2 : index
      %199 = memref.load %arg10[%c0_156, %c2_157] : memref<2x3xf32, #tpu.memory_space<smem>>
      %cst_158 = arith.constant 0.000000e+00 : f32
      %200 = arith.addf %cst_158, %199 : f32
      %c1_159 = arith.constant 1 : index
      %c2_160 = arith.constant 2 : index
      %201 = memref.load %arg10[%c1_159, %c2_160] : memref<2x3xf32, #tpu.memory_space<smem>>
      %202 = arith.addf %200, %201 : f32
      %cst_161 = arith.constant 1.638400e+04 : f32
      %203 = arith.subf %cst_161, %202 : f32
      %cst_162 = arith.constant 1.02030408 : f32
      %204 = arith.mulf %cst_162, %203 : f32
      %cst_163 = arith.constant 1.000000e+04 : f32
      %205 = arith.mulf %cst_163, %202 : f32
      %206 = arith.addf %204, %205 : f32
      %c0_164 = arith.constant 0 : index
      %c2_165 = arith.constant 2 : index
      %207 = memref.load %arg9[%c0_164, %c2_165] : memref<2x3xf32, #tpu.memory_space<smem>>
      %c0_166 = arith.constant 0 : index
      %c2_167 = arith.constant 2 : index
      %208 = memref.load %arg10[%c0_166, %c2_167] : memref<2x3xf32, #tpu.memory_space<smem>>
      %cst_168 = arith.constant 4.096000e+03 : f32
      %209 = arith.subf %cst_168, %208 : f32
      %210 = arith.addf %209, %207 : f32
      %cst_169 = arith.constant 1.02030408 : f32
      %211 = arith.mulf %cst_169, %210 : f32
      %cst_170 = arith.constant 1.000000e+04 : f32
      %212 = arith.mulf %cst_170, %207 : f32
      %213 = arith.addf %211, %212 : f32
      %cst_171 = arith.constant 2.000000e+00 : f32
      %214 = arith.mulf %cst_171, %213 : f32
      %cst_172 = arith.constant 1.000000e+00 : f32
      %215 = arith.addf %214, %cst_172 : f32
      %cst_173 = arith.constant 1.000000e+00 : f32
      %216 = arith.addf %206, %cst_173 : f32
      %217 = arith.divf %215, %216 : f32
      %218 = arith.cmpf one, %217, %217 : f32
      %cst_174 = arith.constant 1.000000e+00 : f32
      %219 = arith.select %218, %cst_174, %217 : f32
      %cst_175 = arith.constant 0.000000e+00 : f32
      %220 = arith.addf %cst_175, %219 : f32
      %c1_176 = arith.constant 1 : index
      %c2_177 = arith.constant 2 : index
      %221 = memref.load %arg9[%c1_176, %c2_177] : memref<2x3xf32, #tpu.memory_space<smem>>
      %c1_178 = arith.constant 1 : index
      %c2_179 = arith.constant 2 : index
      %222 = memref.load %arg10[%c1_178, %c2_179] : memref<2x3xf32, #tpu.memory_space<smem>>
      %cst_180 = arith.constant 4.096000e+03 : f32
      %223 = arith.subf %cst_180, %222 : f32
      %224 = arith.addf %223, %221 : f32
      %cst_181 = arith.constant 1.02030408 : f32
      %225 = arith.mulf %cst_181, %224 : f32
      %cst_182 = arith.constant 1.000000e+04 : f32
      %226 = arith.mulf %cst_182, %221 : f32
      %227 = arith.addf %225, %226 : f32
      %cst_183 = arith.constant 2.000000e+00 : f32
      %228 = arith.mulf %cst_183, %227 : f32
      %cst_184 = arith.constant 1.000000e+00 : f32
      %229 = arith.addf %228, %cst_184 : f32
      %cst_185 = arith.constant 1.000000e+00 : f32
      %230 = arith.addf %206, %cst_185 : f32
      %231 = arith.divf %229, %230 : f32
      %232 = arith.cmpf one, %231, %231 : f32
      %cst_186 = arith.constant 1.000000e+00 : f32
      %233 = arith.select %232, %cst_186, %231 : f32
      %234 = arith.addf %220, %233 : f32
      %cst_187 = arith.constant 2.000000e+00 : f32
      %235 = arith.divf %234, %cst_187 : f32
      %cst_188 = arith.constant 1.000000e+00 : f32
      %236 = arith.subf %cst_188, %235 : f32
      %237 = arith.addf %198, %236 : f32
      %cst_189 = arith.constant 5.000000e+00 : f32
      %238 = arith.divf %237, %cst_189 : f32
      %c0_190 = arith.constant 0 : index
      %c0_191 = arith.constant 0 : index
      %c0_192 = arith.constant 0 : index
      %239 = vector.load %arg8[%c0_190, %c0_191, %c0_192] : memref<2x8x128xf32, #tpu.memory_space<vmem>>, vector<1x8x128xf32>
      %240 = vector.shape_cast %239 : vector<1x8x128xf32> to vector<8x128xf32>
      %241 = vector.shape_cast %240 : vector<8x128xf32> to vector<1x8x128xf32>
      %cst_193 = arith.constant dense<0.000000e+00> : vector<1xf32>
      %242 = vector.multi_reduction <add>, %241, %cst_193 [1, 2] : vector<1x8x128xf32> to vector<1xf32>
      %243 = vector.shape_cast %242 : vector<1xf32> to vector<1x1x1xf32>
      %244 = vector.extract %243[0, 0, 0] : f32 from vector<1x1x1xf32>
      %cst_194 = arith.constant 2.457600e+04 : f32
      %245 = arith.divf %244, %cst_194 : f32
      %c1_195 = arith.constant 1 : index
      %c0_196 = arith.constant 0 : index
      %c0_197 = arith.constant 0 : index
      %246 = vector.load %arg8[%c1_195, %c0_196, %c0_197] : memref<2x8x128xf32, #tpu.memory_space<vmem>>, vector<1x8x128xf32>
      %247 = vector.shape_cast %246 : vector<1x8x128xf32> to vector<8x128xf32>
      %248 = vector.shape_cast %247 : vector<8x128xf32> to vector<1x8x128xf32>
      %cst_198 = arith.constant dense<0.000000e+00> : vector<1xf32>
      %249 = vector.multi_reduction <add>, %248, %cst_198 [1, 2] : vector<1x8x128xf32> to vector<1xf32>
      %250 = vector.shape_cast %249 : vector<1xf32> to vector<1x1x1xf32>
      %251 = vector.extract %250[0, 0, 0] : f32 from vector<1x1x1xf32>
      %cst_199 = arith.constant 8.192000e+03 : f32
      %252 = arith.divf %251, %cst_199 : f32
      %253 = arith.addf %238, %252 : f32
      %254 = arith.addf %253, %245 : f32
      %c0_200 = arith.constant 0 : index
      %c0_201 = arith.constant 0 : index
      %255 = memref.load %arg6[%c0_200, %c0_201] : memref<1x1xf32, #tpu.memory_space<smem>>
      memref.store %254, %arg6[%c0_200, %c0_201] : memref<1x1xf32, #tpu.memory_space<smem>>
    } else {
    }
    return
  }
  func.func @transform_0(%arg0: i32, %arg1: i32) -> (i32, i32, i32, i32) {
    %c0_i32 = arith.constant 0 : i32
    %c0_i32_0 = arith.constant 0 : i32
    %c0_i32_1 = arith.constant 0 : i32
    return %arg0, %c0_i32, %arg1, %c0_i32_0 : i32, i32, i32, i32
  }
  func.func @transform_1(%arg0: i32, %arg1: i32) -> (i32, i32, i32, i32) {
    %c0_i32 = arith.constant 0 : i32
    %c0_i32_0 = arith.constant 0 : i32
    %c0_i32_1 = arith.constant 0 : i32
    return %arg0, %c0_i32, %arg1, %c0_i32_0 : i32, i32, i32, i32
  }
  func.func @transform_2(%arg0: i32, %arg1: i32) -> (i32, i32, i32, i32) {
    %c2_i32 = arith.constant 2 : i32
    %c0_i32 = arith.constant 0 : i32
    %c0_i32_0 = arith.constant 0 : i32
    return %arg0, %c2_i32, %arg1, %c0_i32 : i32, i32, i32, i32
  }
  func.func @transform_3(%arg0: i32, %arg1: i32) -> (i32, i32, i32, i32) {
    %c0_i32 = arith.constant 0 : i32
    %c0_i32_0 = arith.constant 0 : i32
    %c0_i32_1 = arith.constant 0 : i32
    return %arg0, %c0_i32, %arg1, %c0_i32_0 : i32, i32, i32, i32
  }
  func.func @transform_4(%arg0: i32, %arg1: i32) -> (i32, i32) {
    %c0_i32 = arith.constant 0 : i32
    %c0_i32_0 = arith.constant 0 : i32
    %c0_i32_1 = arith.constant 0 : i32
    return %c0_i32, %c0_i32_0 : i32, i32
  }
}

</mosaic_0001>

<bundles_post_ra>
// kernel: tpu_custom_call.1
= control target key start
LH: loop header
LB: loop body
LE: loop exit
PB: predicated region body
PF: predicated region fallthrough
CT: control target
= control target key end

     0   :  { %s1869_s0 = inlined_call_operand.hbm [shape: f32[2,3,32,128], index: 0, kind: input, shape index: {}]   ;;  %s1870_s1 = inlined_call_operand.hbm [shape: f32[2,3,32,128], index: 1, kind: input, shape index: {}]   ;;  %s1871_s2 = inlined_call_operand.hbm [shape: f32[2,4,32,128], index: 2, kind: input, shape index: {}]   ;;  %s1872_s3 = inlined_call_operand.hbm [shape: f32[2,1,32,128], index: 3, kind: input, shape index: {}]   ;;  %s1873_s4 = inlined_call_operand.hbm [shape: f32[1,1], index: 4, kind: output, shape index: {}]  }
   0x1   :  { %1886 = sst [smem:[#allocation26_spill]] %s1869_s0 }
   0x2   :  { %1887 = sst [smem:[#allocation27_spill]] %s1870_s1 }
   0x3   :  { %1888 = sst [smem:[#allocation28_spill]] %s1871_s2 }
   0x4   :  { %1889 = sst [smem:[#allocation29_spill]] %s1872_s3 }
   0x5   :  { %1890 = sst [smem:[#allocation30_spill]] %s1873_s4 }
   0x6   :  { %9 = vsyncpa [#allocation7], 0 }
   0x7   :  { %11 = vsyncpa [#allocation7 + $0x1], 0 }
   0x8   :  { %12 = vsyncpa [#allocation10], 0 }
   0x9   :  { %14 = vsyncpa [#allocation10 + $0x1], 0 }
   0xa   :  { %15 = vsyncpa [#allocation13], 0 }
   0xb   :  { %17 = vsyncpa [#allocation13 + $0x1], 0 }
   0xc   :  { %18 = vsyncpa [#allocation8], 0  ;;  %s1411_s15 = smov 0   ;;  %s1413_s16 = smov 0  }
   0xd   :  { %s1415_s17 = smov 0   ;;  %s1417_s18 = smov 0  }
   0xe   :  { %s1419_s19 = smov 0   ;;  %s1421_s20 = smov 0  }
   0xf LB: > { %1891 = sst [smem:[#allocation19_spill]] %s1360_s16  ;;  %s1440_s21 = sadd.s32 4294967295, %s1376_s20   ;;  %s1376_s20 = sphi %s1421_s20, %s24_s20   ;;  %s1372_s19 = sphi %s1419_s19, %s1918_s19   ;;  %s1368_s18 = sphi %s1417_s18, %s1917_s18   ;;  %s1364_s17 = sphi %s1415_s17, %s1916_s17   ;;  %s1360_s16 = sphi %s1413_s16, %s1915_s16   ;;  %s1356_s15 = sphi %s1411_s15, %s1914_s15  }
  0x10   : > { %1892 = sst [smem:[#allocation20_spill]] %s1364_s17  ;;  %s36_s22 = sadd.s32 1, %s1372_s19 }
  0x11   : > { %1893 = sst [smem:[#allocation21_spill]] %s1372_s19  ;;  %p38_p0 = scmp.ge.s32.totalorder %s36_s22, 2 }
  0x12   : > { %1894 = sst [smem:[#allocation22_spill]] %s1376_s20  ;;  %s45_s23 = sadd.s32 1, %s1364_s17 }
  0x13   : > { %1895 = sst [smem:[#allocation23_spill]] %s1440_s21  ;;  %p52_p1 = scmp.ne.s32.totalorder %s1364_s17, %s1360_s16 }
  0x14   : > { %p53_p2 = scmp.eq.s32.totalorder %s1376_s20, 0  ;;  %s1920_s22 = smov (%p38_p0, %s36_s22), 0 }
  0x15   : > { %1896 = sst [smem:[#allocation24_spill]] %s1920_s22  ;;  %p58_p4 = scmp.ne.s32.totalorder %s1360_s16, %s1356_s15 }
  0x16   : > { %p54_p3 = por %p53_p2, %p52_p1  ;;  %s40_s24 = ssub.s32 %s1372_s19, %s1920_s22 }
  0x17   : > { %p59_p5 = scmp.eq.s32.totalorder %s1440_s21, 0  ;;  %p43_p6 = scmp.eq.s32.totalorder %s40_s24, 0 }
  0x18   : > { %p1088_p8 = scmp.lt.s32.totalorder %s1376_s20, 2  ;;  %s1462_s27 = sand.u32 1, %s1364_s17  }
  0x19   : > { %p1453_p7 = por %p59_p5, %p58_p4  ;;  %s1037_s28 = smul.u32 1536, %s1372_s19 }
  0x1a   : > { %s1459_s26 = scalar_select %p43_p6, %s1364_s17, %s45_s23  }
  0x1b   : > { %s1897_s25 = scalar_select %p1453_p7, 1, 0 }
  0x1c   : > { %1898 = sst [smem:[#allocation25_spill]] %s1459_s26  ;;  %s1036_s29 = smul.u32 96, %s1462_s27 }
  0x1d   : > { %p1466_p9 = pnand %p1088_p8, %p54_p3  ;;  %s210_s5 = sand.u32 1, %s1376_s20  }
  0x1e   : > { %s1900_s1 = sld [smem:[#allocation27_spill]]  ;;  %s214_s9 = scalar_lea.vmem [#allocation9], %s1036_s29 }
  0x1f   : > { %s223_s10 = sshll.u32 %s214_s9, 4  ;;  %s1483_s11 = scalar_lea.sflag [#allocation10], %s210_s5  ;;  %s1480_s10 = int_to_ptr.vmem [resolvable:$true] %s223_s10 }
  0x20   : > { %p1489_p12 = pneg %p1466_p9 }
  0x24   : > { %s1476_s8 = scalar_lea.hbm %s1900_s1, %s1037_s28  ;;  %s1186_s23 = scalar_lea.hbm %s1900_s1, 3072 }
  0x25   : > { %s1181_s12 = scalar_lea.hbm %s1476_s8, 1536  ;;  %p1187_p1 = scmp.lt.u32.totalorder %s1476_s8, %s1900_s1 }
  0x26   : > { %p1182_p11 = scmp.ne.s32.totalorder %s1476_s8, %s1181_s12  ;;  %p1188_p2 = scmp.lt.u32.totalorder %s1186_s23, %s1181_s12 }
  0x27   : > { %p1190_p4 = scmp.lt.u32.totalorder %s1181_s12, %s1476_s8 }
  0x28   : > { %p1184_p13 = pnand %p1489_p12, %p1182_p11  ;;  %p1189_p3 = por %p1188_p2, %p1187_p1 }
  0x2a   : > { %p1185_p0 = pneg %p1184_p13  ;;  %p1191_p5 = por %p1190_p4, %p1189_p3 }
  0x2c   : > { %p1192_p6 = pnand %p1191_p5, %p1185_p0 }
  0x2e   : > { %1195 = shalt.err (!%p1192_p6)
}
  0x2f   : > { %s1196_s5 = scalar_lea.vmem %s1480_s10, 1536  ;;  %s1378_s7 = smov [#allocation9]  }
  0x30   : > { %p1197_p8 = scmp.ne.s32.totalorder %s1480_s10, %s1196_s5  ;;  %s1201_s9 = sshll.u32 %s1378_s7, 4  ;;  %s1202_s9 = int_to_ptr.vmem [resolvable:$false] %s1201_s9 }
  0x31   : > { %s1203_s14 = scalar_lea.vmem %s1202_s9, 3072  ;;  %p1204_p10 = scmp.lt.s32.totalorder %s1480_s10, %s1202_s9 }
  0x32   : > { %p1199_p11 = pnand %p1197_p8, %p1489_p12  ;;  %p1205_p7 = scmp.lt.s32.totalorder %s1203_s14, %s1196_s5 }
  0x34   : > { %p1200_p13 = pneg %p1199_p11  ;;  %p1206_p1 = por %p1205_p7, %p1204_p10 }
  0x36   : > { %p1207_p2 = pnand %p1206_p1, %p1200_p13 }
  0x38   : > { %1210 = shalt.err (!%p1207_p2)
}
  0x39   : > { %s1875_s12 = smov 128   ;;  %s1877_s15 = smov 8  }
  0x3a   : > { %1081 = dma.hbm_to_vmem [thread:$0]  (!%p1466_p9), %s1476_s8, 1536, %s1480_s10, %s1483_s11, %s1875_s12, %s1875_s12, %s1877_s15  }
  0x3b   : > { %p278_p7 = scmp.lt.s32.totalorder %s1376_s20, 3  ;;  %p1902_p10 = scmp.ge.s32.totalorder %s1376_s20, 1 }
  0x3c   : > { %s1904_s0 = sld [smem:[#allocation26_spill]]  ;;  %s191_s7 = scalar_lea.vmem [#allocation6], %s1036_s29 }
  0x3d   : > { %p1519_p0 = pnand %p1902_p10, %p278_p7  ;;  %s200_s9 = sshll.u32 %s191_s7, 4  ;;  %s1532_s9 = int_to_ptr.vmem [resolvable:$true] %s200_s9 }
  0x3e   : > { %s986_s8 = sshll.u32 %s1462_s27, 5  ;;  %s188_s10 = scalar_lea.sflag [#allocation7], %s1462_s27 }
  0x3f   : > { %s1903_s23 = scalar_select %p1519_p0, 1, 0 }
  0x42   : > { %s1528_s5 = scalar_lea.hbm %s1904_s0, %s1037_s28  ;;  %s1216_s28 = scalar_lea.hbm %s1904_s0, 3072 }
  0x43   : > { %s1211_s14 = scalar_lea.hbm %s1528_s5, 1536  ;;  %p1217_p6 = scmp.lt.u32.totalorder %s1528_s5, %s1904_s0 }
  0x44   : > { %p1212_p3 = scmp.ne.s32.totalorder %s1528_s5, %s1211_s14  ;;  %p1218_p8 = scmp.lt.u32.totalorder %s1216_s28, %s1211_s14 }
  0x45   : > { %p1220_p13 = scmp.lt.u32.totalorder %s1211_s14, %s1528_s5 }
  0x46   : > { %p1214_p4 = pnand %p1212_p3, %p1489_p12  ;;  %p1219_p11 = por %p1218_p8, %p1217_p6 }
  0x48   : > { %p1215_p5 = pneg %p1214_p4  ;;  %p1221_p1 = por %p1220_p13, %p1219_p11 }
  0x4a   : > { %p1222_p2 = pnand %p1221_p1, %p1215_p5 }
  0x4c   : > { %1225 = shalt.err (!%p1222_p2)
}
  0x4d   : > { %s1226_s29 = scalar_lea.vmem %s1532_s9, 1536  ;;  %s1381_s12 = smov [#allocation6]  }
  0x4e   : > { %p1227_p7 = scmp.ne.s32.totalorder %s1532_s9, %s1226_s29  ;;  %s1231_s7 = sshll.u32 %s1381_s12, 4  ;;  %s1232_s7 = int_to_ptr.vmem [resolvable:$false] %s1231_s7 }
  0x4f   : > { %s1233_s15 = scalar_lea.vmem %s1232_s7, 3072  ;;  %p1234_p4 = scmp.lt.s32.totalorder %s1532_s9, %s1232_s7 }
  0x50   : > { %p1229_p10 = pnand %p1227_p7, %p1489_p12  ;;  %p1235_p0 = scmp.lt.s32.totalorder %s1233_s15, %s1226_s29 }
  0x52   : > { %p1230_p3 = pneg %p1229_p10  ;;  %p1236_p6 = por %p1235_p0, %p1234_p4 }
  0x54   : > { %p1237_p8 = pnand %p1236_p6, %p1230_p3 }
  0x56   : > { %1240 = shalt.err (!%p1237_p8)
}
  0x57   : > { %s1905_s14 = smov 8   ;;  %s1906_s24 = smov 128  }
  0x58   : > { %1078 = dma.hbm_to_vmem [thread:$0]  (!%p1466_p9), %s1528_s5, 1536, %s1532_s9, %s188_s10, %s1906_s24, %s1906_s24, %s1905_s14  }
  0x59   : > { %s1032_s28 = sshll.u32 %s1372_s19, 11  ;;  %s1907_s2 = sld [smem:[#allocation28_spill]] }
  0x5a   : > { %s237_s7 = scalar_lea.vmem [#allocation11], %s986_s8 }
  0x5b   : > { %s247_s15 = sshll.u32 %s237_s7, 4  ;;  %s1570_s15 = int_to_ptr.vmem [resolvable:$true] %s247_s15 }
  0x5f   : > { %s875_s29 = scalar_lea.hbm %s1907_s2, %s1032_s28  ;;  %s1246_s10 = scalar_lea.hbm %s1907_s2, 4096 }
  0x60   : > { %s1568_s0 = scalar_lea.hbm %s875_s29, 1024  ;;  %s1271_s1 = scalar_lea.hbm %s875_s29, 1536 }
  0x61   : > { %p1242_p0 = scmp.ne.s32.totalorder %s1568_s0, %s1271_s1  ;;  %p1247_p13 = scmp.lt.u32.totalorder %s1568_s0, %s1907_s2 }
  0x62   : > { %p1248_p1 = scmp.lt.u32.totalorder %s1246_s10, %s1271_s1  ;;  %p1250_p7 = scmp.lt.u32.totalorder %s1271_s1, %s1568_s0 }
  0x63   : > { %p1244_p5 = pnand %p1242_p0, %p1489_p12 }
  0x64   : > { %p1249_p2 = por %p1248_p1, %p1247_p13 }
  0x65   : > { %p1245_p11 = pneg %p1244_p5 }
  0x66   : > { %p1251_p10 = por %p1250_p7, %p1249_p2 }
  0x68   : > { %p1252_p3 = pnand %p1251_p10, %p1245_p11 }
  0x6a   : > { %1255 = shalt.err (!%p1252_p3)
}
  0x6b   : > { %s1256_s12 = scalar_lea.vmem %s1570_s15, 512  ;;  %s1382_s29 = smov [#allocation11]  }
  0x6c   : > { %p1257_p4 = scmp.ne.s32.totalorder %s1570_s15, %s1256_s12  ;;  %s1261_s7 = sshll.u32 %s1382_s29, 4  ;;  %s1262_s7 = int_to_ptr.vmem [resolvable:$false] %s1261_s7 }
  0x6d   : > { %s1263_s5 = scalar_lea.vmem %s1262_s7, 1024  ;;  %p1264_p0 = scmp.lt.s32.totalorder %s1570_s15, %s1262_s7 }
  0x6e   : > { %p1259_p6 = pnand %p1257_p4, %p1489_p12  ;;  %p1265_p5 = scmp.lt.s32.totalorder %s1263_s5, %s1256_s12 }
  0x70   : > { %p1260_p8 = pneg %p1259_p6  ;;  %p1266_p13 = por %p1265_p5, %p1264_p0 }
  0x72   : > { %p1267_p1 = pnand %p1266_p13, %p1260_p8 }
  0x74   : > { %1270 = shalt.err (!%p1267_p1)
}
  0x75   : > { %1084 = dma.hbm_to_vmem [thread:$0]  (!%p1466_p9), %s1568_s0, 512, %s1570_s15, %s1483_s11, %s1906_s24, %s1906_s24, %s1905_s14  }
  0x76   : > { %s1033_s1 = sshll.u32 %s1372_s19, 9  ;;  %s261_s9 = scalar_lea.vmem [#allocation12], %s986_s8 }
  0x77   : > { %s270_s10 = sshll.u32 %s261_s9, 4  ;;  %s1908_s3 = sld [smem:[#allocation29_spill]]  ;;  %s1604_s10 = int_to_ptr.vmem [resolvable:$true] %s270_s10 }
  0x78   : > { %s258_s29 = scalar_lea.sflag [#allocation13], %s1462_s27 }
  0x7d   : > { %s1602_s12 = scalar_lea.hbm %s1908_s3, %s1033_s1  ;;  %s1277_s8 = scalar_lea.hbm %s1908_s3, 1024 }
  0x7e   : > { %s1272_s7 = scalar_lea.hbm %s1602_s12, 512  ;;  %p1278_p10 = scmp.lt.u32.totalorder %s1602_s12, %s1908_s3 }
  0x7f   : > { %p1273_p11 = scmp.ne.s32.totalorder %s1602_s12, %s1272_s7  ;;  %p1279_p3 = scmp.lt.u32.totalorder %s1277_s8, %s1272_s7 }
  0x80   : > { %p1281_p6 = scmp.lt.u32.totalorder %s1272_s7, %s1602_s12 }
  0x81   : > { %p1275_p2 = pnand %p1273_p11, %p1489_p12  ;;  %p1280_p4 = por %p1279_p3, %p1278_p10 }
  0x83   : > { %p1276_p7 = pneg %p1275_p2  ;;  %p1282_p8 = por %p1281_p6, %p1280_p4 }
  0x85   : > { %p1283_p0 = pnand %p1282_p8, %p1276_p7 }
  0x87   : > { %1286 = shalt.err (!%p1283_p0)
}
  0x88   : > { %s1287_s1 = scalar_lea.vmem %s1604_s10, 512  ;;  %s1383_s9 = smov [#allocation12]  }
  0x89   : > { %p1288_p5 = scmp.ne.s32.totalorder %s1604_s10, %s1287_s1  ;;  %s1292_s28 = sshll.u32 %s1383_s9, 4  ;;  %s1293_s28 = int_to_ptr.vmem [resolvable:$false] %s1292_s28 }
  0x8a   : > { %s1294_s6 = scalar_lea.vmem %s1293_s28, 1024  ;;  %p1295_p11 = scmp.lt.s32.totalorder %s1604_s10, %s1293_s28 }
  0x8b   : > { %p1290_p13 = pnand %p1288_p5, %p1489_p12  ;;  %p1296_p2 = scmp.lt.s32.totalorder %s1294_s6, %s1287_s1 }
  0x8d   : > { %p1291_p1 = pneg %p1290_p13  ;;  %p1297_p10 = por %p1296_p2, %p1295_p11 }
  0x8f   : > { %p1298_p3 = pnand %p1297_p10, %p1291_p1 }
  0x91   : > { %1301 = shalt.err (!%p1298_p3)
}
  0x92   : > { %1087 = dma.hbm_to_vmem [thread:$0]  (!%p1466_p9), %s1602_s12, 512, %s1604_s10, %s258_s29, %s1906_s24, %s1906_s24, %s1905_s14  }
  0x93   : > { %p1909_p12 = scmp.ne.s32.totalorder %s1903_s23, 0 }
  0x94   : > { %s284_s13 = sand.u32 (!%p1909_p12), 1, %s1360_s16   ;;  %p1910_p7 = scmp.ne.s32.totalorder (!%p1909_p12), %s1897_s25, 0 }
  0x95   : > { %282 = sbr.rel (%p1909_p12) target bundleno = 538 (0x21a), region = 36  ;;  %s285_s0 = scalar_lea.sflag (!%p1909_p12), [#allocation7], %s284_s13 }
  0x96   : > { %s1040_s7 = smul.u32 (!%p1909_p12), 96, %s284_s13 }
  0x98   : > { %s1636_s11 = scalar_lea.vmem (!%p1909_p12), [#allocation6], %s1040_s7 }
  0x9c   : > { %1339 = dma.done.wait (%p1910_p7), %s285_s0, 1536  }
  0x9d   : > { %1341 = vsyncadd (%p1910_p7), %s285_s0, 4294965760  ;;  %s293_s27 = sand.u32 1, %s1440_s21   ;;  %s1643_s14 = scalar_lea.vmem [#allocation9], %s1040_s7 }
  0x9e   : > { %s294_s30 = scalar_lea.sflag [#allocation10], %s293_s27 }
  0x9f   : > { %1343 = dma.done.wait (%p1910_p7), %s294_s30, 2048  }
  0xa0   : > { %1345 = vsyncadd (%p1910_p7), %s294_s30, 4294965248  ;;  %s993_s23 = sshll.u32 %s284_s13, 5  ;;  %s312_s10 = scalar_lea.sflag [#allocation13], %s284_s13 }
  0xa1   : > { %s1649_s24 = scalar_lea.vmem [#allocation11], %s993_s23  ;;  %s1651_s12 = scalar_lea.vmem [#allocation12], %s993_s23 }
  0xa2   : > { %1347 = dma.done.wait (%p1910_p7), %s312_s10, 512  }
  0xa3   : > { %1349 = vsyncadd (%p1910_p7), %s312_s10, 4294966784  ;;  %p354_p9 = scmp.eq.s32.totalorder %s1368_s18, 0 }
  0xa4   : > { %v1384_v0 = vmov (%p354_p9), 0.0  }
  0xa5   : > { %359 = sbr.rel (!%p354_p9) target bundleno = 172 (0xac), region = 56  ;;  %360 = vst [vmem:[#allocation3] sm:$0xff] (%p354_p9), %v1384_v0  ;;  %361 = vst [vmem:[#allocation3 + $0x8] sm:$0xff] (%p354_p9), %v1384_v0 }
  0xac PF: > { %v996_v1 = vld [vmem:[%s1636_s11 + $0x20] sm:$0xff]  ;;  %v997_v2 = vld [vmem:[%s1636_s11 + $0x28] sm:$0xff]  ;;  %v998_v3 = vld [vmem:[%s1636_s11 + $0x30] sm:$0xff]  ;;  %p651_p4 = scmp.eq.s32.totalorder %s1368_s18, 1  ;;  %s1012_s25 = sshll.u32 %s1368_s18, 7 }
  0xad   : > { %v999_v4 = vld [vmem:[%s1636_s11 + $0x38] sm:$0xff]  ;;  %v1663_v5 = vld [vmem:[%s1643_s14 + $0x20] sm:$0xff]  ;;  %v1666_v6 = vld [vmem:[%s1643_s14 + $0x28] sm:$0xff]  ;;  %s587_s8 = scalar_lea.smem [#allocation4], %s1012_s25  ;;  %s599_s5 = scalar_lea.smem [#allocation5], %s1012_s25 }
  0xae   : > { %v1669_v7 = vld [vmem:[%s1643_s14 + $0x30] sm:$0xff]  ;;  %v1672_v8 = vld [vmem:[%s1643_s14 + $0x38] sm:$0xff]  ;;  %v422_v9 = vmul.f32 %v1663_v5, %v996_v1  ;;  %v423_v10 = vmul.f32 %v1666_v6, %v997_v2  ;;  %v1677_v11 = vld [vmem:[%s1636_s11] sm:$0xff]  ;;  %v433_v12 = vadd.f32 %v1663_v5, %v996_v1  ;;  %v434_v13 = vadd.f32 %v1666_v6, %v997_v2  ;;  %s915_s15 = scalar_lea.smem %s587_s8, 1 [#allocation4]  ;;  %s918_s1 = scalar_lea.smem %s599_s5, 1 [#allocation5] }
  0xaf   : > { %v424_v14 = vmul.f32 %v1669_v7, %v998_v3  ;;  %v425_v15 = vmul.f32 %v1672_v8, %v999_v4  ;;  %v1684_v16 = vld [vmem:[%s1636_s11 + $0x8] sm:$0xff]  ;;  %v1687_v17 = vld [vmem:[%s1636_s11 + $0x10] sm:$0xff]  ;;  %v1690_v18 = vld [vmem:[%s1636_s11 + $0x18] sm:$0xff]  ;;  %v464_v19 = vmax.f32 %v1677_v11, %v996_v1  ;;  %v435_v30 = vadd.f32 %v1669_v7, %v998_v3  ;;  %s921_s28 = scalar_lea.smem %s587_s8, 2 [#allocation4]  ;;  %s924_s7 = scalar_lea.smem %s599_s5, 2 [#allocation5] }
  0xb0   : > { %v426_v20 = vadd.f32 %v423_v10, %v422_v9  ;;  %v1694_v21 = vld [vmem:[%s1636_s11 + $0x40] sm:$0xff]  ;;  %v1697_v22 = vld [vmem:[%s1636_s11 + $0x48] sm:$0xff]  ;;  %v465_v23 = vmax.f32 %v1684_v16, %v997_v2  ;;  %v466_v24 = vmax.f32 %v1687_v17, %v998_v3  ;;  %v467_v25 = vmax.f32 %v1690_v18, %v999_v4  ;;  %v1703_v26 = vld [vmem:[%s1636_s11 + $0x50] sm:$0xff] }
  0xb1   : > { %v1706_v27 = vld [vmem:[%s1643_s14] sm:$0xff]  ;;  %v1709_v28 = vld [vmem:[%s1643_s14 + $0x8] sm:$0xff]  ;;  %v468_v29 = vmax.f32 %v464_v19, %v1694_v21  ;;  %v436_v31 = vadd.f32 %v1672_v8, %v999_v4  ;;  %v437_v32 = vadd.f32 %v434_v13, %v433_v12  ;;  %v1715_v34 = vld [vmem:[%s1636_s11 + $0x58] sm:$0xff] }
  0xb2   : > { %v427_v33 = vadd.f32 %v426_v20, %v424_v14  ;;  %v1718_v35 = vld [vmem:[%s1643_s14 + $0x10] sm:$0xff]  ;;  %v1721_v36 = vld [vmem:[%s1643_s14 + $0x18] sm:$0xff]  ;;  %v400_v37 = vmul.f32 %v1706_v27, %v1677_v11  ;;  %v401_v38 = vmul.f32 %v1709_v28, %v1684_v16  ;;  %v469_v39 = vmax.f32 %v465_v23, %v1697_v22  ;;  %v1743_v9 = vld [vmem:[%s1643_s14 + $0x40] sm:$0xff] }
  0xb3   : > { %v402_v40 = vmul.f32 %v1718_v35, %v1687_v17  ;;  %v403_v41 = vmul.f32 %v1721_v36, %v1690_v18  ;;  %v470_v42 = vmax.f32 %v466_v24, %v1703_v26  ;;  %v471_v43 = vmax.f32 %v467_v25, %v1715_v34  ;;  %v1748_v14 = vld [vmem:[%s1643_s14 + $0x48] sm:$0xff]  ;;  %v1754_v24 = vld [vmem:[%s1643_s14 + $0x58] sm:$0xff] }
  0xb4   : > { %v428_v44 = vadd.f32 %v427_v33, %v425_v15  ;;  %v404_v45 = vadd.f32 %v401_v38, %v400_v37  ;;  %v472_v46 = vsub.f32 %v1677_v11, %v468_v29  ;;  %v473_v47 = vsub.f32 %v1684_v16, %v469_v39  ;;  %v1751_v15 = vld [vmem:[%s1643_s14 + $0x50] sm:$0xff] }
  0xb5   : > { %v474_v48 = vsub.f32 %v1687_v17, %v470_v42  ;;  %v475_v49 = vsub.f32 %v1690_v18, %v471_v43  ;;  %v484_v50 = vsub.f32 %v996_v1, %v468_v29  ;;  %v485_v51 = vsub.f32 %v997_v2, %v469_v39 }
  0xb6   : > { %602 = vadd.xlane.f32.xlu1 %v428_v44  ;;  %v405_v52 = vadd.f32 %v404_v45, %v402_v40  ;;  %v476_v53 = vmul.f32 1.442695, %v472_v46  ;;  %v478_v54 = vmul.f32 1.442695, %v473_v47  ;;  %v486_v55 = vsub.f32 %v998_v3, %v470_v42 }
  0xb7   : > { %v480_v56 = vmul.f32 1.442695, %v474_v48  ;;  %v482_v57 = vmul.f32 1.442695, %v475_v49  ;;  %v487_v58 = vsub.f32 %v999_v4, %v471_v43  ;;  %v488_v59 = vmul.f32 1.442695, %v484_v50 }
  0xb8   : > { %v406_v60 = vadd.f32 %v405_v52, %v403_v41  ;;  %1143 = vpow2.f32 %v476_v53  ;;  %v490_v61 = vmul.f32 1.442695, %v485_v51  ;;  %v492_v62 = vmul.f32 1.442695, %v486_v55 }
  0xb9   : > { %1145 = vpow2.f32 %v478_v54  ;;  %v494_v63 = vmul.f32 1.442695, %v487_v58  ;;  %v496_v0 = vsub.f32 %v1694_v21, %v468_v29  ;;  %v497_v1 = vsub.f32 %v1697_v22, %v469_v39 }
  0xba   : > { %1147 = vpow2.f32 %v480_v56  ;;  %v498_v2 = vsub.f32 %v1703_v26, %v470_v42  ;;  %v499_v3 = vsub.f32 %v1715_v34, %v471_v43  ;;  %577 = vadd.xlane.f32.xlu0 %v406_v60  ;;  %v438_v4 = vadd.f32 %v437_v32, %v435_v30 }
  0xbb   : > { %1149 = vpow2.f32 %v482_v57  ;;  %v500_v10 = vmul.f32 1.442695, %v496_v0  ;;  %v502_v12 = vmul.f32 1.442695, %v497_v1  ;;  %v411_v13 = vadd.f32 %v1706_v27, %v1677_v11 }
  0xbc   : > { %1151 = vpow2.f32 %v488_v59  ;;  %v504_v19 = vmul.f32 1.442695, %v498_v2  ;;  %v506_v20 = vmul.f32 1.442695, %v499_v3  ;;  %v439_v23 = vadd.f32 %v438_v4, %v436_v31 }
  0xbd   : > { %1153 = vpow2.f32 %v490_v61  ;;  %v412_v25 = vadd.f32 %v1709_v28, %v1684_v16  ;;  %v413_v29 = vadd.f32 %v1718_v35, %v1687_v17  ;;  %v414_v11 = vadd.f32 %v1721_v36, %v1690_v18 }
  0xbe   : > { %1155 = vpow2.f32 %v492_v62  ;;  %615 = vadd.xlane.f32.xlu1 %v439_v23  ;;  %v455_v30 = vadd.f32 %v1743_v9, %v1694_v21  ;;  %v456_v31 = vadd.f32 %v1748_v14, %v1697_v22  ;;  %v457_v32 = vadd.f32 %v1751_v15, %v1703_v26 }
  0xbf   : > { %1157 = vpow2.f32 %v494_v63  ;;  %v415_v33 = vadd.f32 %v412_v25, %v411_v13  ;;  %v458_v16 = vadd.f32 %v1754_v24, %v1715_v34  ;;  %v444_v17 = vmul.f32 %v1743_v9, %v1694_v21 }
  0xc0   : > { %1159 = vpow2.f32 %v500_v10  ;;  %v459_v18 = vadd.f32 %v456_v31, %v455_v30  ;;  %v445_v37 = vmul.f32 %v1748_v14, %v1697_v22  ;;  %v446_v38 = vmul.f32 %v1751_v15, %v1703_v26 }
  0xc1   : > { %1161 = vpow2.f32 %v502_v12  ;;  %v416_v39 = vadd.f32 %v415_v33, %v413_v29  ;;  %v447_v42 = vmul.f32 %v1754_v24, %v1715_v34 }
  0xc2   : > { %v1144_v40 = vpop.eup %1143  ;;  %1163 = vpow2.f32 %v504_v19  ;;  %v460_v41 = vadd.f32 %v459_v18, %v457_v32  ;;  %v448_v43 = vadd.f32 %v445_v37, %v444_v17  ;;  %v536_v32 = vld [vmem:[#allocation3] sm:$0xff]  ;;  %v551_v17 = vld [vmem:[%s1649_s24 + $0x8] sm:$0xff]  ;;  %v553_v37 = vld [vmem:[%s1649_s24 + $0x18] sm:$0xff] }
  0xc3   : > { %v1146_v44 = vpop.eup %1145  ;;  %1165 = vpow2.f32 %v506_v20  ;;  %v417_v21 = vadd.f32 %v416_v39, %v414_v11  ;;  %v516_v59 = vmul.f32 %v1144_v40, %v1706_v27  ;;  %v552_v18 = vld [vmem:[%s1649_s24 + $0x10] sm:$0xff]  ;;  %v555_v39 = vld [vmem:[%s1651_s12 + $0x8] sm:$0xff] }
  0xc4   : > { %v1148_v45 = vpop.eup %1147  ;;  %v461_v46 = vadd.f32 %v460_v41, %v458_v16  ;;  %v449_v47 = vadd.f32 %v448_v43, %v446_v38  ;;  %v517_v63 = vmul.f32 %v1146_v44, %v1709_v28  ;;  %v550_v16 = vld [vmem:[%s1649_s24] sm:$0xff]  ;;  %v556_v41 = vld [vmem:[%s1651_s12 + $0x10] sm:$0xff] }
  0xc5   : > { %v1150_v48 = vpop.eup %1149  ;;  %590 = vadd.xlane.f32.xlu0 %v417_v21  ;;  %v518_v2 = vmul.f32 %v1148_v45, %v1718_v35  ;;  %v554_v38 = vld [vmem:[%s1651_s12] sm:$0xff]  ;;  %v560_v21 = vsub.f32 %v552_v18, %v556_v41 }
  0xc6   : > { %v1152_v22 = vpop.eup %1151  ;;  %640 = vadd.xlane.f32.xlu1 %v461_v46  ;;  %v450_v26 = vadd.f32 %v449_v47, %v447_v42  ;;  %v519_v10 = vmul.f32 %v1150_v48, %v1721_v36  ;;  %v557_v42 = vld [vmem:[%s1651_s12 + $0x18] sm:$0xff]  ;;  %v558_v43 = vsub.f32 %v550_v16, %v554_v38 }
  0xc7   : > { %v1154_v49 = vpop.eup %1153  ;;  %v508_v50 = vadd.f32 %v1152_v22, %v1144_v40  ;;  %v520_v60 = vmul.f32 %v1152_v22, %v1663_v5  ;;  %v566_v22 = vmul.f32 %v560_v21, %v560_v21 }
  0xc8   : > { %v1156_v51 = vpop.eup %1155  ;;  %v509_v52 = vadd.f32 %v1154_v49, %v1146_v44  ;;  %v521_v0 = vmul.f32 %v1154_v49, %v1666_v6  ;;  %v559_v44 = vsub.f32 %v551_v17, %v555_v39  ;;  %v564_v47 = vmul.f32 %v558_v43, %v558_v43 }
  0xc9   : > { %v1158_v53 = vpop.eup %1157  ;;  %v510_v54 = vadd.f32 %v1156_v51, %v1148_v45  ;;  %627 = vadd.xlane.f32.xlu0 %v450_v26  ;;  %v522_v3 = vmul.f32 %v1156_v51, %v1669_v7  ;;  %v524_v5 = vadd.f32 %v520_v60, %v516_v59  ;;  %v561_v45 = vsub.f32 %v553_v37, %v557_v42  ;;  %v563_v51 = vld [vmem:[#allocation3 + $0x8] sm:$0xff] }
  0xca   : > { %v1160_v34 = vpop.eup %1159  ;;  %v511_v55 = vadd.f32 %v1158_v53, %v1150_v48  ;;  %v523_v27 = vmul.f32 %v1158_v53, %v1672_v8  ;;  %v525_v28 = vadd.f32 %v521_v0, %v517_v63  ;;  %v565_v48 = vmul.f32 %v559_v44, %v559_v44 }
  0xcb   : > { %v1162_v56 = vpop.eup %1161  ;;  %v512_v57 = vadd.f32 %v1160_v34, %v508_v50  ;;  %v528_v12 = vmul.f32 %v1160_v34, %v1743_v9  ;;  %v526_v13 = vadd.f32 %v522_v3, %v518_v2  ;;  %v567_v26 = vmul.f32 %v561_v45, %v561_v45 }
  0xcc   : > { %v1164_v58 = vpop.eup %1163  ;;  %v513_v61 = vadd.f32 %v1162_v56, %v509_v52  ;;  %v529_v6 = vmul.f32 %v1162_v56, %v1748_v14  ;;  %v527_v35 = vadd.f32 %v523_v27, %v519_v10  ;;  %v568_v49 = vadd.f32 %v565_v48, %v564_v47 }
  0xcd   : > { %v1166_v62 = vpop.eup %1165  ;;  %v514_v1 = vadd.f32 %v1164_v58, %v510_v54  ;;  %1167 = vrcp.f32 %v512_v57  ;;  %v530_v19 = vmul.f32 %v1164_v58, %v1751_v15  ;;  %v532_v20 = vadd.f32 %v528_v12, %v524_v5 }
  0xce   : > { %v515_v4 = vadd.f32 %v1166_v62, %v511_v55  ;;  %1169 = vrcp.f32 %v513_v61  ;;  %v531_v7 = vmul.f32 %v1166_v62, %v1754_v24  ;;  %v533_v36 = vadd.f32 %v529_v6, %v525_v28 }
  0xcf   : > { %1171 = vrcp.f32 %v514_v1  ;;  %v534_v8 = vadd.f32 %v530_v19, %v526_v13  ;;  %v569_v50 = vadd.f32 %v568_v49, %v566_v22 }
  0xd0   : > { %1173 = vrcp.f32 %v515_v4  ;;  %v535_v9 = vadd.f32 %v531_v7, %v527_v35 }
  0xd1   : > { %v570_v52 = vadd.f32 %v569_v50, %v567_v26 }
  0xd3   : > { %v571_v53 = vadd.f32 %v570_v52, %v563_v51 }
  0xd5   : > { %572 = vst [vmem:[#allocation3 + $0x8] sm:$0xff] %v571_v53 }
  0xd7   : > { %v1168_v23 = vpop.eup %1167 }
  0xd8   : > { %v1170_v25 = vpop.eup %1169  ;;  %v541_v29 = vmul.f32 %v1168_v23, %v532_v20 }
  0xd9   : > { %v1172_v14 = vpop.eup %1171  ;;  %v542_v15 = vmul.f32 %v1170_v25, %v533_v36 }
  0xda   : > { %v1174_v11 = vpop.eup %1173  ;;  %v543_v30 = vmul.f32 %v1172_v14, %v534_v8 }
  0xdb   : > { %v544_v24 = vmul.f32 %v1174_v11, %v535_v9  ;;  %v545_v31 = vadd.f32 %v542_v15, %v541_v29 }
  0xdc   : > { %v804_v18 = vld [vmem:[#allocation3 + $0x8] sm:$0xff] (%p651_p4) }
  0xdd   : > { %v546_v33 = vadd.f32 %v545_v31, %v543_v30 }
  0xdf   : > { %v547_v40 = vadd.f32 %v546_v33, %v544_v24 }
  0xe1   : > { %v548_v46 = vadd.f32 %v547_v40, %v536_v32 }
  0xe3   : > { %549 = vst [vmem:[#allocation3] sm:$0xff] %v548_v46 }
  0xea   : > { %v791_v17 = vld [vmem:[#allocation3] sm:$0xff] (%p651_p4) }
  0xeb   : > { %792 = vadd.xlane.f32.xlu0 (%p651_p4), %v791_v17 }
  0xef   : > { %805 = vadd.xlane.f32.xlu0 (%p651_p4), %v804_v18 }
 0x143   : > { %v603_v54 = vpop.xlane.xlu1 %602 }
 0x144   : > { %v604_v56 = vrot.slane %v603_v54, 4 }
 0x146   : > { %v605_v61 = vadd.f32 %v604_v56, %v603_v54 }
 0x147   : > { %v578_v34 = vpop.xlane.xlu0 %577 }
 0x148   : > { %v579_v55 = vrot.slane %v578_v34, 4  ;;  %v606_v2 = vrot.slane %v605_v61, 2 }
 0x14a   : > { %v580_v57 = vadd.f32 %v579_v55, %v578_v34  ;;  %v607_v19 = vadd.f32 %v606_v2, %v605_v61 }
 0x14b   : > { %v616_v58 = vpop.xlane.xlu1 %615 }
 0x14c   : > { %v581_v59 = vrot.slane %v580_v57, 2  ;;  %v617_v60 = vrot.slane %v616_v58, 4  ;;  %v608_v25 = vrot.slane %v607_v19, 1 }
 0x14e   : > { %v618_v62 = vadd.f32 %v617_v60, %v616_v58  ;;  %v582_v63 = vadd.f32 %v581_v59, %v580_v57  ;;  %v609_v31 = vadd.f32 %v608_v25, %v607_v19 }
 0x150   : > { %v583_v0 = vrot.slane %v582_v63, 1  ;;  %v619_v1 = vrot.slane %v618_v62, 2 }
 0x152   : > { %v591_v3 = vpop.xlane.xlu0 %590  ;;  %v584_v4 = vadd.f32 %v583_v0, %v582_v63  ;;  %v620_v28 = vadd.f32 %v619_v1, %v618_v62 }
 0x153   : > { %v592_v10 = vrot.slane %v591_v3, 4  ;;  %v641_v27 = vpop.xlane.xlu1 %640 }
 0x154   : > { %v642_v5 = vrot.slane %v641_v27, 4  ;;  %1041 = vpush %v584_v4  ;;  %v621_v23 = vrot.slane %v620_v28, 1 }
 0x155   : > { %v593_v12 = vadd.f32 %v592_v10, %v591_v3 }
 0x156   : > { %v643_v6 = vadd.f32 %v642_v5, %v641_v27  ;;  %v628_v13 = vpop.xlane.xlu0 %627  ;;  %v622_v24 = vadd.f32 %v621_v23, %v620_v28 }
 0x157   : > { %v594_v35 = vrot.slane %v593_v12, 2  ;;  %v629_v7 = vrot.slane %v628_v13, 4 }
 0x158   : > { %v644_v20 = vrot.slane %v643_v6, 2 }
 0x159   : > { %v630_v36 = vadd.f32 %v629_v7, %v628_v13  ;;  %v595_v8 = vadd.f32 %v594_v35, %v593_v12 }
 0x15a   : > { %v645_v9 = vadd.f32 %v644_v20, %v643_v6 }
 0x15b   : > { %v631_v29 = vrot.slane %v630_v36, 2  ;;  %v596_v14 = vrot.slane %v595_v8, 1 }
 0x15c   : > { %v646_v15 = vrot.slane %v645_v9, 1 }
 0x15d   : > { %v632_v11 = vadd.f32 %v631_v29, %v630_v36  ;;  %v597_v30 = vadd.f32 %v596_v14, %v595_v8 }
 0x15e   : > { %v647_v33 = vadd.f32 %v646_v15, %v645_v9 }
 0x15f   : > { %1043 = vpush %v597_v30  ;;  %v633_v32 = vrot.slane %v632_v11, 1 }
 0x160   : > { %1045 = vpush %v609_v31 }
 0x161   : > { %1047 = vpush %v622_v24  ;;  %v634_v16 = vadd.f32 %v633_v32, %v632_v11 }
 0x163   : > { %1049 = vpush %v634_v16 }
 0x164   : > { %1051 = vpush %v647_v33 }
 0x178   : > { %v793_v43 = vpop.xlane.xlu0 (%p651_p4), %792 }
 0x179   : > { %v794_v44 = vrot.slane (%p651_p4), %v793_v43, 4 }
 0x17b   : > { %v795_v21 = vadd.f32 (%p651_p4), %v794_v44, %v793_v43 }
 0x17c   : > { %v806_v45 = vpop.xlane.xlu0 (%p651_p4), %805 }
 0x17d   : > { %v796_v46 = vrot.slane (%p651_p4), %v795_v21, 2  ;;  %v807_v47 = vrot.slane (%p651_p4), %v806_v45, 4 }
 0x17f   : > { %v808_v48 = vadd.f32 (%p651_p4), %v807_v47, %v806_v45  ;;  %v797_v22 = vadd.f32 (%p651_p4), %v796_v46, %v795_v21 }
 0x181   : > { %v809_v26 = vrot.slane (%p651_p4), %v808_v48, 2  ;;  %v798_v49 = vrot.slane (%p651_p4), %v797_v22, 1 }
 0x183   : > { %v810_v50 = vadd.f32 (%p651_p4), %v809_v26, %v808_v48  ;;  %v799_v51 = vadd.f32 (%p651_p4), %v798_v49, %v797_v22 }
 0x185   : > { %s1042_s29 = spop %1041  ;;  %v811_v52 = vrot.slane (%p651_p4), %v810_v50, 1 }
 0x186   : > { %588 = sst [smem:[%s587_s8]] %s1042_s29 }
 0x187   : > { %v812_v53 = vadd.f32 (%p651_p4), %v811_v52, %v810_v50 }
 0x190   : > { %s1044_s9 = spop %1043  ;;  %655 = sbr.rel (!%p651_p4) target bundleno = 517 (0x205), region = 68 }
 0x191   : > { %600 = sst [smem:[%s599_s5]] %s1044_s9  ;;  %s1046_s6 = spop %1045 }
 0x192   : > { %613 = sst [smem:[%s915_s15]] %s1046_s6  ;;  %s1048_s13 = spop %1047 }
 0x193   : > { %625 = sst [smem:[%s918_s1]] %s1048_s13 }
 0x194   : > { %s1050_s0 = spop %1049 }
 0x195   : > { %638 = sst [smem:[%s921_s28]] %s1050_s0  ;;  %s1052_s11 = spop %1051 }
 0x196   : > { %650 = sst [smem:[%s924_s7]] %s1052_s11 }
 0x197   : > { %s1802_s27 = sld [smem:[#allocation5]]  ;;  %s1806_s14 = sld [smem:[#allocation5 + $0x1]] }
 0x198   : > { %s1804_s30 = sld [smem:[#allocation5 + $0x80]]  ;;  %s1808_s23 = sld [smem:[#allocation5 + $0x81]] }
 0x199   : > { %s1810_s24 = sld [smem:[#allocation5 + $0x2]] }
 0x19a   : > { %s1812_s18 = sld [smem:[#allocation5 + $0x82]] }
 0x19e   : > { %s659_s10 = sadd.f32 %s1804_s30, %s1802_s27 }
 0x19f   : > { %s703_s12 = sadd.f32 %s1808_s23, %s1806_s14 }
 0x1a0   : > { %s660_s25 = ssub.f32 16384.0, %s659_s10  ;;  %s662_s29 = smul.f32 400.0, %s659_s10 }
 0x1a1   : > { %s704_s8 = ssub.f32 16384.0, %s703_s12  ;;  %s706_s15 = smul.f32 2500.0, %s703_s12 }
 0x1a2   : > { %s661_s5 = smul.f32 1.1080333, %s660_s25  ;;  %s747_s9 = sadd.f32 %s1812_s18, %s1810_s24 }
 0x1a3   : > { %s705_s1 = smul.f32 1.0412328, %s704_s8  ;;  %s664_s12 = sld [smem:[#allocation4]] }
 0x1a4   : > { %s663_s28 = sadd.f32 %s662_s29, %s661_s5  ;;  %s750_s11 = smul.f32 10000.0, %s747_s9 }
 0x1a5   : > { %s707_s6 = sadd.f32 %s706_s15, %s705_s1  ;;  %s1820_s25 = sld [smem:[#allocation4 + $0x80]] }
 0x1a6   : > { %s672_s13 = sadd.f32 1.0, %s663_s28  ;;  %s1822_s29 = sld [smem:[#allocation4 + $0x1]] }
 0x1a7   : > { %s716_s7 = sadd.f32 1.0, %s707_s6  ;;  %s1826_s8 = sld [smem:[#allocation4 + $0x81]] }
 0x1a8   : > { %v673_v37 = vstv %s672_s13  ;;  %s748_s0 = ssub.f32 16384.0, %s747_s9  ;;  %s1026_s1 = sld [smem:[#allocation4 + $0x2]] }
 0x1a9   : > { %1175 = vrcp.f32 %v673_v37  ;;  %v717_v38 = vstv %s716_s7  ;;  %s709_s15 = ssub.f32 4096.0, %s1806_s14  ;;  %s1027_s6 = sld [smem:[#allocation4 + $0x82]] }
 0x1aa   : > { %1177 = vrcp.f32 %v717_v38  ;;  %s749_s2 = smul.f32 1.0203041, %s748_s0  ;;  %s725_s5 = ssub.f32 4096.0, %s1808_s23 }
 0x1ab   : > { %s753_s9 = ssub.f32 4096.0, %s1810_s24  ;;  %s668_s7 = smul.f32 400.0, %s664_s12 }
 0x1ac   : > { %s751_s3 = sadd.f32 %s750_s11, %s749_s2  ;;  %s684_s11 = smul.f32 400.0, %s1820_s25 }
 0x1ad   : > { %s665_s2 = ssub.f32 4096.0, %s1802_s27  ;;  %s712_s17 = smul.f32 2500.0, %s1822_s29 }
 0x1ae   : > { %s760_s10 = sadd.f32 1.0, %s751_s3  ;;  %s728_s20 = smul.f32 2500.0, %s1826_s8 }
 0x1af   : > { %s681_s3 = ssub.f32 4096.0, %s1804_s30  ;;  %s756_s24 = smul.f32 10000.0, %s1026_s1 }
 0x1b0   : > { %v761_v39 = vstv %s760_s10  ;;  %s666_s28 = sadd.f32 %s665_s2, %s664_s12  ;;  %s772_s12 = smul.f32 10000.0, %s1027_s6 }
 0x1b1   : > { %1179 = vrcp.f32 %v761_v39  ;;  %s682_s13 = sadd.f32 %s1820_s25, %s681_s3 }
 0x1b2   : > { %s710_s0 = sadd.f32 %s1822_s29, %s709_s15  ;;  %s667_s22 = smul.f32 1.1080333, %s666_s28 }
 0x1b3   : > { %v1176_v40 = vpop.eup %1175  ;;  %s769_s10 = ssub.f32 4096.0, %s1812_s18  ;;  %s683_s27 = smul.f32 1.1080333, %s682_s13 }
 0x1b4   : > { %v1178_v41 = vpop.eup %1177  ;;  %1053 = vpush %v1176_v40  ;;  %s726_s19 = sadd.f32 %s1826_s8, %s725_s5  ;;  %s711_s30 = smul.f32 1.0412328, %s710_s0 }
 0x1b5   : > { %1055 = vpush %v1178_v41  ;;  %s754_s26 = sadd.f32 %s1026_s1, %s753_s9 }
 0x1b6   : > { %s727_s16 = smul.f32 1.0412328, %s726_s19  ;;  %s770_s14 = sadd.f32 %s1027_s6, %s769_s10 }
 0x1b7   : > { %s755_s23 = smul.f32 1.0203041, %s754_s26  ;;  %s669_s4 = sadd.f32 %s668_s7, %s667_s22 }
 0x1b8   : > { %s685_s21 = sadd.f32 %s684_s11, %s683_s27  ;;  %s771_s2 = smul.f32 1.0203041, %s770_s14 }
 0x1b9   : > { %s713_s3 = sadd.f32 %s712_s17, %s711_s30  ;;  %s670_s25 = smul.f32 2.0, %s669_s4 }
 0x1ba   : > { %s729_s15 = sadd.f32 %s728_s20, %s727_s16  ;;  %s686_s28 = smul.f32 2.0, %s685_s21 }
 0x1bb   : > { %v1180_v42 = vpop.eup %1179  ;;  %s757_s18 = sadd.f32 %s756_s24, %s755_s23  ;;  %s714_s5 = smul.f32 2.0, %s713_s3 }
 0x1bc   : > { %1057 = vpush %v1180_v42  ;;  %s773_s13 = sadd.f32 %s772_s12, %s771_s2  ;;  %s730_s0 = smul.f32 2.0, %s729_s15 }
 0x1bd   : > { %s671_s9 = sadd.f32 1.0, %s670_s25  ;;  %s758_s29 = smul.f32 2.0, %s757_s18  ;;  %1059 = vpush %v799_v51 }
 0x1be   : > { %s687_s19 = sadd.f32 1.0, %s686_s28  ;;  %s774_s8 = smul.f32 2.0, %s773_s13  ;;  %1061 = vpush %v812_v53 }
 0x1bf   : > { %s715_s10 = sadd.f32 1.0, %s714_s5 }
 0x1c0   : > { %s731_s26 = sadd.f32 1.0, %s730_s0 }
 0x1c1   : > { %s759_s22 = sadd.f32 1.0, %s758_s29 }
 0x1c2   : > { %s775_s17 = sadd.f32 1.0, %s774_s8 }
 0x1e5   : > { %s1054_s7 = spop %1053 }
 0x1e6   : > { %s676_s1 = smul.f32 %s1054_s7, %s671_s9  ;;  %s1056_s11 = spop %1055 }
 0x1e7   : > { %s691_s27 = smul.f32 %s1054_s7, %s687_s19 }
 0x1e8   : > { %p677_p6 = scmp.ne.f32.partialorder %s676_s1, %s676_s1  ;;  %s720_s16 = smul.f32 %s1056_s11, %s715_s10 }
 0x1e9   : > { %p692_p8 = scmp.ne.f32.partialorder %s691_s27, %s691_s27  ;;  %s735_s4 = smul.f32 %s1056_s11, %s731_s26 }
 0x1ea   : > { %s1922_s1 = smov (%p677_p6, %s676_s1), 1.0  ;;  %p721_p0 = scmp.ne.f32.partialorder %s720_s16, %s720_s16 }
 0x1eb   : > { %s1924_s27 = smov (%p692_p8, %s691_s27), 1.0  ;;  %p736_p5 = scmp.ne.f32.partialorder %s735_s4, %s735_s4 }
 0x1ec   : > { %s694_s20 = sadd.f32 %s1924_s27, %s1922_s1  ;;  %s1926_s16 = smov (%p721_p0, %s720_s16), 1.0 }
 0x1ed   : > { %s1058_s21 = spop %1057  ;;  %s1928_s4 = smov (%p736_p5, %s735_s4), 1.0 }
 0x1ee   : > { %s697_s6 = smul.f32 0.5, %s694_s20  ;;  %s738_s14 = sadd.f32 %s1928_s4, %s1926_s16 }
 0x1ef   : > { %s764_s30 = smul.f32 %s1058_s21, %s759_s22  ;;  %s1060_s5 = spop %1059 }
 0x1f0   : > { %s779_s23 = smul.f32 %s1058_s21, %s775_s17  ;;  %s698_s24 = ssub.f32 1.0, %s697_s6 }
 0x1f1   : > { %p765_p13 = scmp.ne.f32.partialorder %s764_s30, %s764_s30  ;;  %s741_s2 = smul.f32 0.5, %s738_s14 }
 0x1f2   : > { %p780_p1 = scmp.ne.f32.partialorder %s779_s23, %s779_s23  ;;  %s1062_s0 = spop %1061 }
 0x1f3   : > { %s1930_s30 = smov (%p765_p13, %s764_s30), 1.0  ;;  %s742_s3 = ssub.f32 1.0, %s741_s2 }
 0x1f4   : > { %s1932_s23 = smov (%p780_p1, %s779_s23), 1.0  ;;  %s816_s9 = smul.f32 0.00012207031, %s1062_s0 }
 0x1f5   : > { %s743_s12 = sadd.f32 %s742_s3, %s698_s24  ;;  %s803_s29 = smul.f32 4.0690105e-05, %s1060_s5 }
 0x1f6   : > { %s782_s15 = sadd.f32 %s1932_s23, %s1930_s30 }
 0x1f8   : > { %s785_s25 = smul.f32 0.5, %s782_s15 }
 0x1fa   : > { %s786_s18 = ssub.f32 1.0, %s785_s25 }
 0x1fc   : > { %s787_s28 = sadd.f32 %s786_s18, %s743_s12 }
 0x1fe   : > { %s790_s13 = smul.f32 0.2, %s787_s28 }
 0x200   : > { %s817_s19 = sadd.f32 %s816_s9, %s790_s13 }
 0x202   : > { %s818_s10 = sadd.f32 %s817_s19, %s803_s29 }
 0x204   : > { %820 = sst [smem:[#allocation14]] %s818_s10 }
 0x205 PF: > { %s1911_s8 = sld [smem:[#allocation23_spill]]  ;;  %s1912_s22 = sld [smem:[#allocation30_spill]] }
 0x20b   : > { %p1089_p11 = scmp.eq.s32.totalorder %s1911_s8, 1  ;;  %s1302_s1 = scalar_lea.hbm %s1912_s22, 16 }
 0x20c   : > { %p1303_p2 = scmp.ne.s32.totalorder %s1912_s22, %s1302_s1  ;;  %p1308_p12 = scmp.lt.u32.totalorder %s1302_s1, %s1912_s22 }
 0x20e   : > { %p1304_p10 = pnand %p1303_p2, %p1089_p11 }
 0x210   : > { %p1305_p3 = pneg %p1304_p10 }
 0x212   : > { %p1310_p7 = pnand %p1308_p12, %p1305_p3 }
 0x214   : > { %1313 = shalt.err (!%p1310_p7)
}
 0x215   : > { %s1385_s4 = smov [#allocation14]  }
 0x216   : > { %1072 = dma.smem_to_hbm (%p1089_p11), %s1385_s4, 16, %s1912_s22, [#allocation8]  }
 0x217   : > { %1351 = dma.done.wait (%p1089_p11), [#allocation8], 16  }
 0x218   : > { %1353 = vsyncadd (%p1089_p11), [#allocation8], 4294967280 }
 0x219   : > { %834 = sfence }
 0x21a PF: > { %s1913_s6 = sld [smem:[#allocation22_spill]]  ;;  %s1914_s15 = sld [smem:[#allocation19_spill]] }
 0x21b   : > { %s1915_s16 = sld [smem:[#allocation20_spill]]  ;;  %s1916_s17 = sld [smem:[#allocation25_spill]] }
 0x21c   : > { %s1917_s18 = sld [smem:[#allocation21_spill]]  ;;  %s1918_s19 = sld [smem:[#allocation24_spill]] }
 0x220   : > { %s24_s20 = sadd.s32 1, %s1913_s6  }
 0x221   : > { %p21_p9 = scmp.ge.s32.totalorder %s24_s20, 4  }
 0x223   :  { %23 = sbr.rel (!%p21_p9) target bundleno = 15 (0xf), region = 143 }
 0x22a   :  { %840 = vsyncpa [#allocation7], 1 }
 0x22b   :  { %842 = vsyncpa [#allocation7 + $0x1], 1 }
 0x22c   :  { %843 = vsyncpa [#allocation10], 1 }
 0x22d   :  { %845 = vsyncpa [#allocation10 + $0x1], 1 }
 0x22e   :  { %846 = vsyncpa [#allocation13], 1 }
 0x22f   :  { %848 = vsyncpa [#allocation13 + $0x1], 1 }
 0x230   :  { %849 = vsyncpa [#allocation8], 1 }
 0x231   :  { %851 = vsyncpa [#allocation8 + $0x1], 1 }

</bundles_post_ra>
